<compile_context>
chip_gen: v5e
topology: v5e:2x2
jax: 0.10.0
libtpu: 0.0.40
codegen_flags: <defaults>
</compile_context>

<pallas_src>
import functools

import jax
import jax.numpy as jnp
from jax.experimental import pallas as pl
from jax.experimental.pallas import tpu as pltpu

_VMEM = pl.BlockSpec(memory_space=pltpu.MemorySpace.VMEM)


# ----------------------------------------------------------------------------
# Kernel 1: conv(+ReLU) at gathered pixel rows -> GNN1 (emb + GCN layers) -> mean_nodes
# ----------------------------------------------------------------------------
def _gnn1_fused_kernel(*refs, n_layers):
    (cols_ref, convw_ref, convb_ref, embw_ref, embb_ref,
     adj_ref, snorm_ref, ro_ref) = refs[:8]
    wb_refs = refs[8:8 + 2 * n_layers]
    o_ref = refs[8 + 2 * n_layers]

    bf16, f32 = jnp.bfloat16, jnp.float32

    # 3x3 same-padding conv (as im2col matmul) + bias + ReLU, at the gathered pixel rows.
    feats = jnp.dot(cols_ref[...].astype(bf16), convw_ref[...].astype(bf16),
                    preferred_element_type=f32) + convb_ref[...]
    feats = jnp.maximum(feats, 0.0)

    # Linear node embedding.
    h = jnp.dot(feats.astype(bf16), embw_ref[...].astype(bf16),
                preferred_element_type=f32) + embb_ref[...]

    # GCN layers: ReLU(((adj_norm @ h) @ W + b) * snorm) [+ h]
    adj = adj_ref[...].astype(bf16)
    snorm = snorm_ref[...]
    for l in range(n_layers):
        w_ref, b_ref = wb_refs[2 * l], wb_refs[2 * l + 1]
        agg = jnp.dot(adj, h.astype(bf16), preferred_element_type=f32)
        z = jnp.dot(agg.astype(bf16), w_ref[...].astype(bf16),
                    preferred_element_type=f32) + b_ref[...]
        z = jnp.maximum(z * snorm, 0.0)
        if w_ref.shape[0] == w_ref.shape[1]:   # residual when in_dim == out_dim
            z = z + h
        h = z

    # dgl.mean_nodes readout over each pixel sub-graph.
    o_ref[...] = jnp.dot(ro_ref[...].astype(bf16), h.astype(bf16),
                         preferred_element_type=f32).astype(o_ref.dtype)


def gnn1_fused(cols_g, conv_w, conv_b, emb_w, emb_b, adj, snorm, readout, gcn_wb):
    """cols_g:(N_pix,9*Cin) gathered im2col rows -> (N_super, hid1)."""
    f32 = jnp.float32
    n_layers = len(gcn_wb)
    n_sup = readout.shape[0]
    hid = emb_w.shape[1]
    ins = [cols_g.astype(f32),
           conv_w.astype(f32),
           conv_b.reshape(1, -1).astype(f32),
           emb_w.astype(f32),
           emb_b.reshape(1, -1).astype(f32),
           adj.astype(f32),
           snorm.reshape(-1, 1).astype(f32),
           readout.astype(f32)]
    for (w, b) in gcn_wb:
        ins += [w.astype(f32), b.reshape(1, -1).astype(f32)]
    # TODO(synk): for production-scale graphs (N >~ 2-4k nodes vs v7x's 64 MiB VMEM),
    #             row-tile adj with a "parallel" grid (also engages both v7x TensorCores)
    #             instead of whole-array VMEM residency.
    return pl.pallas_call(
        functools.partial(_gnn1_fused_kernel, n_layers=n_layers),
        out_shape=jax.ShapeDtypeStruct((n_sup, hid), f32),
        in_specs=[_VMEM] * len(ins),
        out_specs=_VMEM,
    )(*ins)


# ----------------------------------------------------------------------------
# Kernel 2: GNN2 (emb + GCN layers) -> mean_nodes -> MLP readout (Linear+ReLU, Linear)
# ----------------------------------------------------------------------------
def _gnn2_fused_kernel(*refs, n_layers):
    (hin_ref, embw_ref, embb_ref, adj_ref, snorm_ref, ro_ref,
     m1w_ref, m1b_ref, m2w_ref, m2b_ref) = refs[:10]
    wb_refs = refs[10:10 + 2 * n_layers]
    o_ref = refs[10 + 2 * n_layers]

    bf16, f32 = jnp.bfloat16, jnp.float32

    h = jnp.dot(hin_ref[...].astype(bf16), embw_ref[...].astype(bf16),
                preferred_element_type=f32) + embb_ref[...]

    adj = adj_ref[...].astype(bf16)
    snorm = snorm_ref[...]
    for l in range(n_layers):
        w_ref, b_ref = wb_refs[2 * l], wb_refs[2 * l + 1]
        agg = jnp.dot(adj, h.astype(bf16), preferred_element_type=f32)
        z = jnp.dot(agg.astype(bf16), w_ref[...].astype(bf16),
                    preferred_element_type=f32) + b_ref[...]
        z = jnp.maximum(z * snorm, 0.0)
        if w_ref.shape[0] == w_ref.shape[1]:
            z = z + h
        h = z

    # dgl.mean_nodes readout -> per-graph features.
    hg = jnp.dot(ro_ref[...].astype(bf16), h.astype(bf16), preferred_element_type=f32)

    # MLP readout head: Linear + ReLU, Linear -> logits.
    z1 = jnp.dot(hg.astype(bf16), m1w_ref[...].astype(bf16),
                 preferred_element_type=f32) + m1b_ref[...]
    z1 = jnp.maximum(z1, 0.0)
    o_ref[...] = (jnp.dot(z1.astype(bf16), m2w_ref[...].astype(bf16),
                          preferred_element_type=f32) + m2b_ref[...]).astype(o_ref.dtype)


def gnn2_fused(h_in, emb_w, emb_b, adj, snorm, readout, m1w, m1b, m2w, m2b, gcn_wb):
    f32 = jnp.float32
    n_layers = len(gcn_wb)
    n_graphs = readout.shape[0]
    n_classes = m2w.shape[1]
    ins = [h_in.astype(f32),
           emb_w.astype(f32),
           emb_b.reshape(1, -1).astype(f32),
           adj.astype(f32),
           snorm.reshape(-1, 1).astype(f32),
           readout.astype(f32),
           m1w.astype(f32),
           m1b.reshape(1, -1).astype(f32),
           m2w.astype(f32),
           m2b.reshape(1, -1).astype(f32)]
    for (w, b) in gcn_wb:
        ins += [w.astype(f32), b.reshape(1, -1).astype(f32)]
    return pl.pallas_call(
        functools.partial(_gnn2_fused_kernel, n_layers=n_layers),
        out_shape=jax.ShapeDtypeStruct((n_graphs, n_classes), f32),
        in_specs=[_VMEM] * len(ins),
        out_specs=_VMEM,
    )(*ins)


# ----------------------------------------------------------------------------
# JAX-side index plumbing (im2col + data-dependent row gather)
# ----------------------------------------------------------------------------
def im2col_3x3(images_nchw):
    """(B,Cin,H,W) NCHW -> (B*H*W, 9*Cin), rows in (b,h,w) row-major order."""
    B, Cin, H, W = images_nchw.shape
    x = jnp.transpose(images_nchw, (0, 2, 3, 1))                 # NHWC
    xp = jnp.pad(x, ((0, 0), (1, 1), (1, 1), (0, 0)))
    cols = jnp.concatenate(
        [xp[:, dh:dh + H, dw:dw + W, :] for dh in range(3) for dw in range(3)],
        axis=-1).reshape(B * H * W, 9 * Cin)
    return cols


# ----------------------------------------------------------------------------
# Full MyGCNNet forward
# ----------------------------------------------------------------------------
def mygcn_forward(params,
                  images,
                  adj_super_norm, edges_feat, nodes_num_norm_sqrt, edges_num_norm_sqrt,
                  pixel_data_where,
                  adj_pixel_norm, pixel_edges_feat, pixel_nodes_num_norm_sqrt,
                  pixel_edges_num_norm_sqrt,
                  pix_readout, sup_readout):
    # edges_feat / pixel_edges_feat / *_edges_num_norm_sqrt accepted but unused:
    # the plain-GCN layers in this ablation do not consume edge features.
    del edges_feat, edges_num_norm_sqrt, pixel_edges_feat, pixel_edges_num_norm_sqrt

    B, Cin, H, W = images.shape
    Cout = params["conv_w"].shape[0]

    # --- im2col + pixel gather (conv_feature is only consumed through this row gather,
    #     and conv+ReLU is per-pixel, so gathering the im2col rows first is exact) ---
    cols = im2col_3x3(images)                                     # (B*H*W, 9*Cin)
    flat_idx = (pixel_data_where[:, 0] * (H * W)
                + pixel_data_where[:, 1] * W
                + pixel_data_where[:, 2])
    cols_g = jnp.take(cols, flat_idx, axis=0)                     # (N_pixel, 9*Cin)
    conv_wm = jnp.transpose(params["conv_w"], (2, 3, 1, 0)).reshape(9 * Cin, Cout)

    # --- kernel 1: conv + GNN1 stack + mean_nodes readout -> superpixel features ---
    gcn1_feature = gnn1_fused(
        cols_g, conv_wm, params["conv_b"],
        params["emb1_w"], params["emb1_b"],
        adj_pixel_norm, pixel_nodes_num_norm_sqrt, pix_readout,
        params["gcn1"])

    # --- kernel 2: GNN2 stack + mean_nodes readout + MLP head -> logits ---
    logits = gnn2_fused(
        gcn1_feature, params["emb2_w"], params["emb2_b"],
        adj_super_norm, nodes_num_norm_sqrt, sup_readout,
        params["mlp1_w"], params["mlp1_b"], params["mlp2_w"], params["mlp2_b"],
        params["gcn2"])

    # TODO(synk): BatchNorm1d inside GCNLayer omitted (no clean single-kernel equivalent
    #             for train-mode batch statistics; inference-mode default init is identity-like).
    return logits


# ----------------------------------------------------------------------------
# Deterministic parameter / graph construction helpers
# ----------------------------------------------------------------------------
def init_params(key, cin, conv_dim, hid1, hid2, n_classes, n_gcn1=2, n_gcn2=2):
    ks = iter(jax.random.split(key, 32))

    def dense(k, fan_in, shape):
        return jax.random.normal(k, shape, jnp.float32) / jnp.sqrt(float(fan_in))

    return {
        "conv_w": dense(next(ks), cin * 9, (conv_dim, cin, 3, 3)),
        "conv_b": jnp.zeros((conv_dim,), jnp.float32),
        "emb1_w": dense(next(ks), conv_dim, (conv_dim, hid1)),
        "emb1_b": jnp.zeros((hid1,), jnp.float32),
        "emb2_w": dense(next(ks), hid1, (hid1, hid2)),
        "emb2_b": jnp.zeros((hid2,), jnp.float32),
        "gcn1": [(dense(next(ks), hid1, (hid1, hid1)), jnp.zeros((hid1,), jnp.float32))
                 for _ in range(n_gcn1)],
        "gcn2": [(dense(next(ks), hid2, (hid2, hid2)), jnp.zeros((hid2,), jnp.float32))
                 for _ in range(n_gcn2)],
        "mlp1_w": dense(next(ks), hid2, (hid2, hid2 // 2)),
        "mlp1_b": jnp.zeros((hid2 // 2,), jnp.float32),
        "mlp2_w": dense(next(ks), hid2 // 2, (hid2 // 2, n_classes)),
        "mlp2_b": jnp.zeros((n_classes,), jnp.float32),
    }


def block_ring_norm_adj(n_nodes, group):
    """Block-diagonal ring graph per group, with self-loops, D^-1/2 (A+I) D^-1/2."""
    idx = jnp.arange(n_nodes)
    g = idx // group
    nxt = (idx % group + 1) % group + g * group
    A = jnp.zeros((n_nodes, n_nodes), jnp.float32)
    A = A.at[idx, nxt].set(1.0).at[nxt, idx].set(1.0)
    A = A + jnp.eye(n_nodes, dtype=jnp.float32)
    dinv = 1.0 / jnp.sqrt(A.sum(axis=1))
    return A * dinv[:, None] * dinv[None, :]


def mean_readout_matrix(n_nodes, group):
    """(n_graphs, n_nodes) matrix implementing dgl.mean_nodes for equal-size graphs."""
    seg = jnp.arange(n_nodes) // group
    n_graphs = n_nodes // group
    return (jax.nn.one_hot(seg, n_graphs, dtype=jnp.float32).T) / float(group)


# ----------------------------------------------------------------------------
if __name__ == "__main__":
    key = jax.random.PRNGKey(0)
    B, CIN, H, W = 2, 3, 16, 16
    CONV_DIM, HID1, HID2, N_CLASSES = 32, 32, 32, 10
    P_PER = 8                      # pixel nodes per superpixel (pixel sub-graph size)
    S_PER = 8                      # superpixels per image (graph size in batched_graph)
    N_P = B * S_PER * P_PER        # 128 pixel nodes
    N_S = B * S_PER                # 16 superpixel nodes

    k_img, k_h, k_w, k_ef, k_pef, k_param = jax.random.split(key, 6)

    images = jax.random.normal(k_img, (B, CIN, H, W), jnp.float32)

    # pixel_data_where: (batch_idx, h, w) for every pixel node
    bidx = (jnp.arange(N_P) // (S_PER * P_PER)).astype(jnp.int32)
    hidx = jax.random.randint(k_h, (N_P,), 0, H, dtype=jnp.int32)
    widx = jax.random.randint(k_w, (N_P,), 0, W, dtype=jnp.int32)
    pixel_data_where = jnp.stack([bidx, hidx, widx], axis=1)

    # batched graphs as dense normalized adjacencies
    adj_pixel_norm = block_ring_norm_adj(N_P, P_PER)   # batched_pixel_graph
    adj_super_norm = block_ring_norm_adj(N_S, S_PER)   # batched_graph

    # per-node 1/sqrt(num_nodes) normalizers (as in the DGL runner)
    pixel_nodes_num_norm_sqrt = jnp.full((N_P,), 1.0 / jnp.sqrt(float(P_PER)), jnp.float32)
    nodes_num_norm_sqrt = jnp.full((N_S,), 1.0 / jnp.sqrt(float(S_PER)), jnp.float32)

    # edge feats / edge normalizers (unused by the plain-GCN ablation layers)
    pixel_edges_feat = jax.random.normal(k_pef, (N_P * 2, 1), jnp.float32)
    edges_feat = jax.random.normal(k_ef, (N_S * 2, 1), jnp.float32)
    pixel_edges_num_norm_sqrt = jnp.ones((N_P * 2,), jnp.float32)
    edges_num_norm_sqrt = jnp.ones((N_S * 2,), jnp.float32)

    # readout (dgl.mean_nodes) matrices
    pix_readout = mean_readout_matrix(N_P, P_PER)      # (N_S, N_P)
    sup_readout = mean_readout_matrix(N_S, S_PER)      # (B, N_S)

    params = init_params(k_param, CIN, CONV_DIM, HID1, HID2, N_CLASSES)

    fwd = jax.jit(mygcn_forward)
    logits = fwd(
        params, images,
        adj_super_norm, edges_feat, nodes_num_norm_sqrt, edges_num_norm_sqrt,
        pixel_data_where,
        adj_pixel_norm, pixel_edges_feat, pixel_nodes_num_norm_sqrt,
        pixel_edges_num_norm_sqrt,
        pix_readout, sup_readout)

    logits = jax.block_until_ready(logits)
    assert logits.shape == (B, N_CLASSES), logits.shape
    assert bool(jnp.all(jnp.isfinite(logits)))
    print("KERNEL_OK")
</pallas_src>

<mosaic_0001>
module attributes {stable_mosaic.version = 11 : i64} {
  func.func @_gnn1_fused_kernel(%arg0: memref<128x27xf32, #tpu.memory_space<vmem>>, %arg1: memref<27x32xf32, #tpu.memory_space<vmem>>, %arg2: memref<1x32xf32, #tpu.memory_space<vmem>>, %arg3: memref<32x32xf32, #tpu.memory_space<vmem>>, %arg4: memref<1x32xf32, #tpu.memory_space<vmem>>, %arg5: memref<128x128xf32, #tpu.memory_space<vmem>>, %arg6: memref<128x1xf32, #tpu.memory_space<vmem>>, %arg7: memref<16x128xf32, #tpu.memory_space<vmem>>, %arg8: memref<32x32xf32, #tpu.memory_space<vmem>>, %arg9: memref<1x32xf32, #tpu.memory_space<vmem>>, %arg10: memref<32x32xf32, #tpu.memory_space<vmem>>, %arg11: memref<1x32xf32, #tpu.memory_space<vmem>>, %arg12: memref<16x32xf32, #tpu.memory_space<vmem>>) attributes {dimension_semantics = [], scalar_prefetch = 0 : i64, scratch_operands = 0 : i64, tpu.core_type = #tpu.core_type<tc>} {
    %c0 = arith.constant 0 : index
    %c0_0 = arith.constant 0 : index
    %0 = vector.load %arg0[%c0, %c0_0] : memref<128x27xf32, #tpu.memory_space<vmem>>, vector<128x27xf32>
    %1 = arith.truncf %0 : vector<128x27xf32> to vector<128x27xbf16>
    %c0_1 = arith.constant 0 : index
    %c0_2 = arith.constant 0 : index
    %2 = vector.load %arg1[%c0_1, %c0_2] : memref<27x32xf32, #tpu.memory_space<vmem>>, vector<27x32xf32>
    %3 = arith.truncf %2 : vector<27x32xf32> to vector<27x32xbf16>
    %cst = arith.constant dense<0.000000e+00> : vector<128x32xf32>
    %4 = tpu.matmul %1, %3, %cst {dimension_numbers = #tpu.dot_dimension_numbers<[1], [0], [0], [1], [0, 0, 1, 1], [], []>} : vector<128x27xbf16>, vector<27x32xbf16>, vector<128x32xf32> -> vector<128x32xf32>
    %c0_3 = arith.constant 0 : index
    %c0_4 = arith.constant 0 : index
    %5 = vector.load %arg2[%c0_3, %c0_4] : memref<1x32xf32, #tpu.memory_space<vmem>>, vector<1x32xf32>
    %6 = vector.broadcast %5 : vector<1x32xf32> to vector<128x32xf32>
    %7 = arith.addf %4, %6 : vector<128x32xf32>
    %cst_5 = arith.constant 0.000000e+00 : f32
    %8 = vector.broadcast %cst_5 : f32 to vector<128x32xf32>
    %9 = arith.maximumf %7, %8 : vector<128x32xf32>
    %10 = arith.truncf %9 : vector<128x32xf32> to vector<128x32xbf16>
    %c0_6 = arith.constant 0 : index
    %c0_7 = arith.constant 0 : index
    %11 = vector.load %arg3[%c0_6, %c0_7] : memref<32x32xf32, #tpu.memory_space<vmem>>, vector<32x32xf32>
    %12 = arith.truncf %11 : vector<32x32xf32> to vector<32x32xbf16>
    %cst_8 = arith.constant dense<0.000000e+00> : vector<128x32xf32>
    %13 = tpu.matmul %10, %12, %cst_8 {dimension_numbers = #tpu.dot_dimension_numbers<[1], [0], [0], [1], [0, 0, 1, 1], [], []>} : vector<128x32xbf16>, vector<32x32xbf16>, vector<128x32xf32> -> vector<128x32xf32>
    %c0_9 = arith.constant 0 : index
    %c0_10 = arith.constant 0 : index
    %14 = vector.load %arg4[%c0_9, %c0_10] : memref<1x32xf32, #tpu.memory_space<vmem>>, vector<1x32xf32>
    %15 = vector.broadcast %14 : vector<1x32xf32> to vector<128x32xf32>
    %16 = arith.addf %13, %15 : vector<128x32xf32>
    %c0_11 = arith.constant 0 : index
    %c0_12 = arith.constant 0 : index
    %17 = vector.load %arg5[%c0_11, %c0_12] : memref<128x128xf32, #tpu.memory_space<vmem>>, vector<128x128xf32>
    %18 = arith.truncf %17 : vector<128x128xf32> to vector<128x128xbf16>
    %c0_13 = arith.constant 0 : index
    %c0_14 = arith.constant 0 : index
    %19 = vector.load %arg6[%c0_13, %c0_14] : memref<128x1xf32, #tpu.memory_space<vmem>>, vector<128x1xf32>
    %20 = arith.truncf %16 : vector<128x32xf32> to vector<128x32xbf16>
    %cst_15 = arith.constant dense<0.000000e+00> : vector<128x32xf32>
    %21 = tpu.matmul %18, %20, %cst_15 {dimension_numbers = #tpu.dot_dimension_numbers<[1], [0], [0], [1], [0, 0, 1, 1], [], []>} : vector<128x128xbf16>, vector<128x32xbf16>, vector<128x32xf32> -> vector<128x32xf32>
    %22 = arith.truncf %21 : vector<128x32xf32> to vector<128x32xbf16>
    %c0_16 = arith.constant 0 : index
    %c0_17 = arith.constant 0 : index
    %23 = vector.load %arg8[%c0_16, %c0_17] : memref<32x32xf32, #tpu.memory_space<vmem>>, vector<32x32xf32>
    %24 = arith.truncf %23 : vector<32x32xf32> to vector<32x32xbf16>
    %cst_18 = arith.constant dense<0.000000e+00> : vector<128x32xf32>
    %25 = tpu.matmul %22, %24, %cst_18 {dimension_numbers = #tpu.dot_dimension_numbers<[1], [0], [0], [1], [0, 0, 1, 1], [], []>} : vector<128x32xbf16>, vector<32x32xbf16>, vector<128x32xf32> -> vector<128x32xf32>
    %c0_19 = arith.constant 0 : index
    %c0_20 = arith.constant 0 : index
    %26 = vector.load %arg9[%c0_19, %c0_20] : memref<1x32xf32, #tpu.memory_space<vmem>>, vector<1x32xf32>
    %27 = vector.broadcast %26 : vector<1x32xf32> to vector<128x32xf32>
    %28 = arith.addf %25, %27 : vector<128x32xf32>
    %29 = vector.broadcast %19 : vector<128x1xf32> to vector<128x32xf32>
    %30 = arith.mulf %28, %29 : vector<128x32xf32>
    %cst_21 = arith.constant 0.000000e+00 : f32
    %31 = vector.broadcast %cst_21 : f32 to vector<128x32xf32>
    %32 = arith.maximumf %30, %31 : vector<128x32xf32>
    %33 = arith.addf %32, %16 : vector<128x32xf32>
    %34 = arith.truncf %33 : vector<128x32xf32> to vector<128x32xbf16>
    %cst_22 = arith.constant dense<0.000000e+00> : vector<128x32xf32>
    %35 = tpu.matmul %18, %34, %cst_22 {dimension_numbers = #tpu.dot_dimension_numbers<[1], [0], [0], [1], [0, 0, 1, 1], [], []>} : vector<128x128xbf16>, vector<128x32xbf16>, vector<128x32xf32> -> vector<128x32xf32>
    %36 = arith.truncf %35 : vector<128x32xf32> to vector<128x32xbf16>
    %c0_23 = arith.constant 0 : index
    %c0_24 = arith.constant 0 : index
    %37 = vector.load %arg10[%c0_23, %c0_24] : memref<32x32xf32, #tpu.memory_space<vmem>>, vector<32x32xf32>
    %38 = arith.truncf %37 : vector<32x32xf32> to vector<32x32xbf16>
    %cst_25 = arith.constant dense<0.000000e+00> : vector<128x32xf32>
    %39 = tpu.matmul %36, %38, %cst_25 {dimension_numbers = #tpu.dot_dimension_numbers<[1], [0], [0], [1], [0, 0, 1, 1], [], []>} : vector<128x32xbf16>, vector<32x32xbf16>, vector<128x32xf32> -> vector<128x32xf32>
    %c0_26 = arith.constant 0 : index
    %c0_27 = arith.constant 0 : index
    %40 = vector.load %arg11[%c0_26, %c0_27] : memref<1x32xf32, #tpu.memory_space<vmem>>, vector<1x32xf32>
    %41 = vector.broadcast %40 : vector<1x32xf32> to vector<128x32xf32>
    %42 = arith.addf %39, %41 : vector<128x32xf32>
    %43 = vector.broadcast %19 : vector<128x1xf32> to vector<128x32xf32>
    %44 = arith.mulf %42, %43 : vector<128x32xf32>
    %cst_28 = arith.constant 0.000000e+00 : f32
    %45 = vector.broadcast %cst_28 : f32 to vector<128x32xf32>
    %46 = arith.maximumf %44, %45 : vector<128x32xf32>
    %47 = arith.addf %46, %33 : vector<128x32xf32>
    %c0_29 = arith.constant 0 : index
    %c0_30 = arith.constant 0 : index
    %48 = vector.load %arg7[%c0_29, %c0_30] : memref<16x128xf32, #tpu.memory_space<vmem>>, vector<16x128xf32>
    %49 = arith.truncf %48 : vector<16x128xf32> to vector<16x128xbf16>
    %50 = arith.truncf %47 : vector<128x32xf32> to vector<128x32xbf16>
    %cst_31 = arith.constant dense<0.000000e+00> : vector<16x32xf32>
    %51 = tpu.matmul %49, %50, %cst_31 {dimension_numbers = #tpu.dot_dimension_numbers<[1], [0], [0], [1], [0, 0, 1, 1], [], []>} : vector<16x128xbf16>, vector<128x32xbf16>, vector<16x32xf32> -> vector<16x32xf32>
    %c0_32 = arith.constant 0 : index
    %c0_33 = arith.constant 0 : index
    %52 = vector.load %arg12[%c0_32, %c0_33] : memref<16x32xf32, #tpu.memory_space<vmem>>, vector<16x32xf32>
    tpu.vector_store %arg12[%c0_32, %c0_33], %51 {strides = array<i32>} : memref<16x32xf32, #tpu.memory_space<vmem>>, vector<16x32xf32>,
    return
  }
}

module attributes {stable_mosaic.version = 11 : i64} {
  func.func @_gnn2_fused_kernel(%arg0: memref<16x32xf32, #tpu.memory_space<vmem>>, %arg1: memref<32x32xf32, #tpu.memory_space<vmem>>, %arg2: memref<1x32xf32, #tpu.memory_space<vmem>>, %arg3: memref<16x16xf32, #tpu.memory_space<vmem>>, %arg4: memref<16x1xf32, #tpu.memory_space<vmem>>, %arg5: memref<2x16xf32, #tpu.memory_space<vmem>>, %arg6: memref<32x16xf32, #tpu.memory_space<vmem>>, %arg7: memref<1x16xf32, #tpu.memory_space<vmem>>, %arg8: memref<16x10xf32, #tpu.memory_space<vmem>>, %arg9: memref<1x10xf32, #tpu.memory_space<vmem>>, %arg10: memref<32x32xf32, #tpu.memory_space<vmem>>, %arg11: memref<1x32xf32, #tpu.memory_space<vmem>>, %arg12: memref<32x32xf32, #tpu.memory_space<vmem>>, %arg13: memref<1x32xf32, #tpu.memory_space<vmem>>, %arg14: memref<2x10xf32, #tpu.memory_space<vmem>>) attributes {dimension_semantics = [], scalar_prefetch = 0 : i64, scratch_operands = 0 : i64, tpu.core_type = #tpu.core_type<tc>} {
    %c0 = arith.constant 0 : index
    %c0_0 = arith.constant 0 : index
    %0 = vector.load %arg0[%c0, %c0_0] : memref<16x32xf32, #tpu.memory_space<vmem>>, vector<16x32xf32>
    %1 = arith.truncf %0 : vector<16x32xf32> to vector<16x32xbf16>
    %c0_1 = arith.constant 0 : index
    %c0_2 = arith.constant 0 : index
    %2 = vector.load %arg1[%c0_1, %c0_2] : memref<32x32xf32, #tpu.memory_space<vmem>>, vector<32x32xf32>
    %3 = arith.truncf %2 : vector<32x32xf32> to vector<32x32xbf16>
    %cst = arith.constant dense<0.000000e+00> : vector<16x32xf32>
    %4 = tpu.matmul %1, %3, %cst {dimension_numbers = #tpu.dot_dimension_numbers<[1], [0], [0], [1], [0, 0, 1, 1], [], []>} : vector<16x32xbf16>, vector<32x32xbf16>, vector<16x32xf32> -> vector<16x32xf32>
    %c0_3 = arith.constant 0 : index
    %c0_4 = arith.constant 0 : index
    %5 = vector.load %arg2[%c0_3, %c0_4] : memref<1x32xf32, #tpu.memory_space<vmem>>, vector<1x32xf32>
    %6 = vector.broadcast %5 : vector<1x32xf32> to vector<16x32xf32>
    %7 = arith.addf %4, %6 : vector<16x32xf32>
    %c0_5 = arith.constant 0 : index
    %c0_6 = arith.constant 0 : index
    %8 = vector.load %arg3[%c0_5, %c0_6] : memref<16x16xf32, #tpu.memory_space<vmem>>, vector<16x16xf32>
    %9 = arith.truncf %8 : vector<16x16xf32> to vector<16x16xbf16>
    %c0_7 = arith.constant 0 : index
    %c0_8 = arith.constant 0 : index
    %10 = vector.load %arg4[%c0_7, %c0_8] : memref<16x1xf32, #tpu.memory_space<vmem>>, vector<16x1xf32>
    %11 = arith.truncf %7 : vector<16x32xf32> to vector<16x32xbf16>
    %cst_9 = arith.constant dense<0.000000e+00> : vector<16x32xf32>
    %12 = tpu.matmul %9, %11, %cst_9 {dimension_numbers = #tpu.dot_dimension_numbers<[1], [0], [0], [1], [0, 0, 1, 1], [], []>} : vector<16x16xbf16>, vector<16x32xbf16>, vector<16x32xf32> -> vector<16x32xf32>
    %13 = arith.truncf %12 : vector<16x32xf32> to vector<16x32xbf16>
    %c0_10 = arith.constant 0 : index
    %c0_11 = arith.constant 0 : index
    %14 = vector.load %arg10[%c0_10, %c0_11] : memref<32x32xf32, #tpu.memory_space<vmem>>, vector<32x32xf32>
    %15 = arith.truncf %14 : vector<32x32xf32> to vector<32x32xbf16>
    %cst_12 = arith.constant dense<0.000000e+00> : vector<16x32xf32>
    %16 = tpu.matmul %13, %15, %cst_12 {dimension_numbers = #tpu.dot_dimension_numbers<[1], [0], [0], [1], [0, 0, 1, 1], [], []>} : vector<16x32xbf16>, vector<32x32xbf16>, vector<16x32xf32> -> vector<16x32xf32>
    %c0_13 = arith.constant 0 : index
    %c0_14 = arith.constant 0 : index
    %17 = vector.load %arg11[%c0_13, %c0_14] : memref<1x32xf32, #tpu.memory_space<vmem>>, vector<1x32xf32>
    %18 = vector.broadcast %17 : vector<1x32xf32> to vector<16x32xf32>
    %19 = arith.addf %16, %18 : vector<16x32xf32>
    %20 = vector.broadcast %10 : vector<16x1xf32> to vector<16x32xf32>
    %21 = arith.mulf %19, %20 : vector<16x32xf32>
    %cst_15 = arith.constant 0.000000e+00 : f32
    %22 = vector.broadcast %cst_15 : f32 to vector<16x32xf32>
    %23 = arith.maximumf %21, %22 : vector<16x32xf32>
    %24 = arith.addf %23, %7 : vector<16x32xf32>
    %25 = arith.truncf %24 : vector<16x32xf32> to vector<16x32xbf16>
    %cst_16 = arith.constant dense<0.000000e+00> : vector<16x32xf32>
    %26 = tpu.matmul %9, %25, %cst_16 {dimension_numbers = #tpu.dot_dimension_numbers<[1], [0], [0], [1], [0, 0, 1, 1], [], []>} : vector<16x16xbf16>, vector<16x32xbf16>, vector<16x32xf32> -> vector<16x32xf32>
    %27 = arith.truncf %26 : vector<16x32xf32> to vector<16x32xbf16>
    %c0_17 = arith.constant 0 : index
    %c0_18 = arith.constant 0 : index
    %28 = vector.load %arg12[%c0_17, %c0_18] : memref<32x32xf32, #tpu.memory_space<vmem>>, vector<32x32xf32>
    %29 = arith.truncf %28 : vector<32x32xf32> to vector<32x32xbf16>
    %cst_19 = arith.constant dense<0.000000e+00> : vector<16x32xf32>
    %30 = tpu.matmul %27, %29, %cst_19 {dimension_numbers = #tpu.dot_dimension_numbers<[1], [0], [0], [1], [0, 0, 1, 1], [], []>} : vector<16x32xbf16>, vector<32x32xbf16>, vector<16x32xf32> -> vector<16x32xf32>
    %c0_20 = arith.constant 0 : index
    %c0_21 = arith.constant 0 : index
    %31 = vector.load %arg13[%c0_20, %c0_21] : memref<1x32xf32, #tpu.memory_space<vmem>>, vector<1x32xf32>
    %32 = vector.broadcast %31 : vector<1x32xf32> to vector<16x32xf32>
    %33 = arith.addf %30, %32 : vector<16x32xf32>
    %34 = vector.broadcast %10 : vector<16x1xf32> to vector<16x32xf32>
    %35 = arith.mulf %33, %34 : vector<16x32xf32>
    %cst_22 = arith.constant 0.000000e+00 : f32
    %36 = vector.broadcast %cst_22 : f32 to vector<16x32xf32>
    %37 = arith.maximumf %35, %36 : vector<16x32xf32>
    %38 = arith.addf %37, %24 : vector<16x32xf32>
    %c0_23 = arith.constant 0 : index
    %c0_24 = arith.constant 0 : index
    %39 = vector.load %arg5[%c0_23, %c0_24] : memref<2x16xf32, #tpu.memory_space<vmem>>, vector<2x16xf32>
    %40 = arith.truncf %39 : vector<2x16xf32> to vector<2x16xbf16>
    %41 = arith.truncf %38 : vector<16x32xf32> to vector<16x32xbf16>
    %cst_25 = arith.constant dense<0.000000e+00> : vector<2x32xf32>
    %42 = tpu.matmul %40, %41, %cst_25 {dimension_numbers = #tpu.dot_dimension_numbers<[1], [0], [0], [1], [0, 0, 1, 1], [], []>} : vector<2x16xbf16>, vector<16x32xbf16>, vector<2x32xf32> -> vector<2x32xf32>
    %43 = arith.truncf %42 : vector<2x32xf32> to vector<2x32xbf16>
    %c0_26 = arith.constant 0 : index
    %c0_27 = arith.constant 0 : index
    %44 = vector.load %arg6[%c0_26, %c0_27] : memref<32x16xf32, #tpu.memory_space<vmem>>, vector<32x16xf32>
    %45 = arith.truncf %44 : vector<32x16xf32> to vector<32x16xbf16>
    %cst_28 = arith.constant dense<0.000000e+00> : vector<2x16xf32>
    %46 = tpu.matmul %43, %45, %cst_28 {dimension_numbers = #tpu.dot_dimension_numbers<[1], [0], [0], [1], [0, 0, 1, 1], [], []>} : vector<2x32xbf16>, vector<32x16xbf16>, vector<2x16xf32> -> vector<2x16xf32>
    %c0_29 = arith.constant 0 : index
    %c0_30 = arith.constant 0 : index
    %47 = vector.load %arg7[%c0_29, %c0_30] : memref<1x16xf32, #tpu.memory_space<vmem>>, vector<1x16xf32>
    %48 = vector.broadcast %47 : vector<1x16xf32> to vector<2x16xf32>
    %49 = arith.addf %46, %48 : vector<2x16xf32>
    %cst_31 = arith.constant 0.000000e+00 : f32
    %50 = vector.broadcast %cst_31 : f32 to vector<2x16xf32>
    %51 = arith.maximumf %49, %50 : vector<2x16xf32>
    %52 = arith.truncf %51 : vector<2x16xf32> to vector<2x16xbf16>
    %c0_32 = arith.constant 0 : index
    %c0_33 = arith.constant 0 : index
    %53 = vector.load %arg8[%c0_32, %c0_33] : memref<16x10xf32, #tpu.memory_space<vmem>>, vector<16x10xf32>
    %54 = arith.truncf %53 : vector<16x10xf32> to vector<16x10xbf16>
    %cst_34 = arith.constant dense<0.000000e+00> : vector<2x10xf32>
    %55 = tpu.matmul %52, %54, %cst_34 {dimension_numbers = #tpu.dot_dimension_numbers<[1], [0], [0], [1], [0, 0, 1, 1], [], []>} : vector<2x16xbf16>, vector<16x10xbf16>, vector<2x10xf32> -> vector<2x10xf32>
    %c0_35 = arith.constant 0 : index
    %c0_36 = arith.constant 0 : index
    %56 = vector.load %arg9[%c0_35, %c0_36] : memref<1x10xf32, #tpu.memory_space<vmem>>, vector<1x10xf32>
    %57 = vector.broadcast %56 : vector<1x10xf32> to vector<2x10xf32>
    %58 = arith.addf %55, %57 : vector<2x10xf32>
    %c0_37 = arith.constant 0 : index
    %c0_38 = arith.constant 0 : index
    %59 = vector.load %arg14[%c0_37, %c0_38] : memref<2x10xf32, #tpu.memory_space<vmem>>, vector<2x10xf32>
    tpu.vector_store %arg14[%c0_37, %c0_38], %58 {strides = array<i32>} : memref<2x10xf32, #tpu.memory_space<vmem>>, vector<2x10xf32>,
    return
  }
}

</mosaic_0001>

<bundles_post_ra>
// kernel: mygcn_forward.3
= control target key start
LH: loop header
LB: loop body
LE: loop exit
PB: predicated region body
PF: predicated region fallthrough
CT: control target
= control target key end

     0   :  { %s506_s0 = inlined_call_operand.vmem [shape: f32[16,32], index: 0, kind: input, shape index: {}]   ;;  %s507_s1 = inlined_call_operand.vmem [shape: f32[32,32], index: 1, kind: input, shape index: {}]   ;;  %s508_s2 = inlined_call_operand.vmem [shape: f32[1,32], index: 2, kind: input, shape index: {}]   ;;  %s509_s3 = inlined_call_operand.vmem [shape: f32[16,16], index: 3, kind: input, shape index: {}]   ;;  %s510_s4 = inlined_call_operand.vmem [shape: f32[16,1], index: 4, kind: input, shape index: {}]   ;;  %s511_s5 = inlined_call_operand.vmem [shape: f32[2,16], index: 5, kind: input, shape index: {}]   ;;  %s512_s6 = inlined_call_operand.vmem [shape: f32[32,16], index: 6, kind: input, shape index: {}]   ;;  %s513_s7 = inlined_call_operand.vmem [shape: f32[1,16], index: 7, kind: input, shape index: {}]   ;;  %s514_s8 = inlined_call_operand.vmem [shape: f32[16,10], index: 8, kind: input, shape index: {}]   ;;  %s515_s9 = inlined_call_operand.vmem [shape: f32[1,10], index: 9, kind: input, shape index: {}]   ;;  %s516_s10 = inlined_call_operand.vmem [shape: f32[32,32], index: 10, kind: input, shape index: {}]   ;;  %s517_s11 = inlined_call_operand.vmem [shape: f32[1,32], index: 11, kind: input, shape index: {}]   ;;  %s518_s12 = inlined_call_operand.vmem [shape: f32[32,32], index: 12, kind: input, shape index: {}]   ;;  %s519_s13 = inlined_call_operand.vmem [shape: f32[1,32], index: 13, kind: input, shape index: {}]   ;;  %s520_s14 = inlined_call_operand.hbm [shape: f32[2,10], index: 14, kind: output, shape index: {}]  }
   0x1   :  { %v54_v0 = vld [vmem:[%s507_s1 + $0x10] sm:$0xff]  ;;  %v55_v1 = vld [vmem:[%s507_s1 + $0x18] sm:$0xff]  ;;  %v52_v2 = vld [vmem:[%s507_s1] sm:$0xff] }
   0x2   :  { %v57_v3 = vpack.c.bf16 %v55_v1, %v54_v0  ;;  %v53_v4 = vld [vmem:[%s507_s1 + $0x8] sm:$0xff]  ;;  %v49_v5 = vld [vmem:[%s506_s0] sm:$0xff] }
   0x3   :  { %v50_v6 = vld [vmem:[%s506_s0 + $0x8] sm:$0xff]  ;;  %v56_v7 = vpack.c.bf16 %v53_v4, %v52_v2 }
   0x4   :  { %72 = vmatpush.bf16.msra.mxu0 %v57_v3 }
   0x5   :  { %19 = vsyncpa [#allocation3], 0  ;;  %v51_v8 = vpack.c.bf16 %v50_v6, %v49_v5  ;;  %vm62_vm0 = vcmask 261120   ;;  %v297_v10 = vld [vmem:[%s508_s2] ss:$0 sm:$0xff]  ;;  %v81_v15 = vld [vmem:[%s509_s3 + $0x8] sm:$0xff] }
   0x6   :  { %v80_v14 = vld [vmem:[%s509_s3] sm:$0xff]  ;;  %vm86_vm1 = vcmask 130048   ;;  %v107_v18 = vld [vmem:[%s516_s10 + $0x10] sm:$0xff]  ;;  %v108_v19 = vld [vmem:[%s516_s10 + $0x18] sm:$0xff]  ;;  %v328_v25 = vmov 0   ;;  %s277_s26 = sshll.u32 %s520_s14, 4  ;;  %s278_s26 = int_to_ptr.hbm [resolvable:$true] %s277_s26 }
   0x7   :  { %v82_v17 = vpack.c.bf16 %v81_v15, %v80_v14  ;;  %v110_v20 = vpack.c.bf16 %v108_v19, %v107_v18  ;;  %v105_v21 = vld [vmem:[%s516_s10] sm:$0xff]  ;;  %v106_v22 = vld [vmem:[%s516_s10 + $0x8] sm:$0xff]  ;;  %296 = vset.pattern.permute.xlu0 %v328_v25  ;;  %v166_v44 = vld [vmem:[%s518_s12 + $0x10] sm:$0xff]  ;;  %vm268_vm2 = vcmask 74752  }
   0x8   :  { %73 = vmatpush.bf16.msra.mxu0 %v56_v7  ;;  %v109_v23 = vpack.c.bf16 %v106_v22, %v105_v21  ;;  %v83_v24 = vld [vmem:[%s510_s4] sm:$0xff]  ;;  %v84_v26 = vld [vmem:[%s510_s4 + $0x8] sm:$0xff]  ;;  %v167_v45 = vld [vmem:[%s518_s12 + $0x18] sm:$0xff]  ;;  %s329_s4 = smov [#allocation2]  }
   0x9   :  { %124 = vmatpush.bf16.msra.mxu2 %v110_v20  ;;  %134 = vperm.xlu0 %296, %v83_v24   ;;  %v298_v30 = vld [vmem:[%s517_s11] ss:$0 sm:$0xff]  ;;  %v169_v46 = vpack.c.bf16 %v167_v45, %v166_v44  ;;  %v165_v48 = vld [vmem:[%s518_s12 + $0x8] sm:$0xff]  ;;  %v219_v53 = vld [vmem:[%s512_s6 + $0x10] sm:$0xff]  ;;  %s275_s24 = sshll.u32 %s329_s4, 4  ;;  %s276_s24 = int_to_ptr.vmem [resolvable:$true] %s275_s24 }
   0xa   :  { %v164_v47 = vld [vmem:[%s518_s12] sm:$0xff]  ;;  %v220_v54 = vld [vmem:[%s512_s6 + $0x18] sm:$0xff]  ;;  %v218_v7 = vld [vmem:[%s512_s6 + $0x8] sm:$0xff] }
   0xb   :  { %286 = vmatmul.msk.bf16.vlgmr.msra.gmra.mxu0 %vm62_vm0, %v51_v8  ;;  %v168_v49 = vpack.c.bf16 %v165_v48, %v164_v47  ;;  %v222_v55 = vpack.c.bf16 %v220_v54, %v219_v53  ;;  %v299_v56 = vld [vmem:[%s519_s13] ss:$0 sm:$0xff] }
   0xc   :  { %v197_v3 = vld [vmem:[%s511_s5] sm:$0x3] }
   0xd   :  { %125 = vmatpush.bf16.msra.mxu2 %v109_v23  ;;  %236 = vmatpush.bf16.msrb.mxu0 %v222_v55  ;;  %v198_v5 = vpack.c.bf16 %v197_v3, %v197_v3  ;;  %v217_v6 = vld [vmem:[%s512_s6] sm:$0xff] }
   0xe   :  { %v221_v8 = vpack.c.bf16 %v218_v7, %v217_v6  ;;  %v300_v15 = vld [vmem:[%s513_s7] ss:$0 sm:$0xff] }
   0xf   :  { %v301_v21 = vld [vmem:[%s515_s9] ss:$0 sm:$0xff] }
  0x11   :  { %139 = vperm.xlu0 %296, %v84_v26   ;;  %237 = vmatpush.bf16.msrb.mxu0 %v221_v8 }
  0x7b   :  { %v135_v31 = vpop.permute.xlu0 %134 }
  0x83   :  { %v140_v37 = vpop.permute.xlu0 %139 }
  0x88   :  { %v75_v9 = vpop.f32.mrf.mxu0 }
  0x89   :  { %v76_v12 = vadd.f32 %v297_v10, %v75_v9  ;;  %v245_v9 = vld [vmem:[%s514_s8] sm:$0xff] }
  0x90   :  { %v77_v11 = vpop.f32.mrf.mxu0 }
  0x91   :  { %v78_v13 = vadd.f32 %v297_v10, %v77_v11  ;;  %v246_v10 = vld [vmem:[%s514_s8 + $0x8] sm:$0xff] }
  0x92   :  { %v247_v11 = vpack.c.bf16 %v246_v10, %v245_v9 }
  0x93   :  { %v85_v16 = vpack.c.bf16 %v78_v13, %v76_v12 }
  0x94   :  { %262 = vmatpush.bf16.msrb.mxu2 %v247_v11 }
  0x95   :  { %97 = vmatpush.bf16.msra.mxu1 %v85_v16 }
  0x98   :  { %287 = vmatmul.msk.bf16.vlgmr.msra.gmra.mxu1 %vm86_vm1, %v82_v17 }
  0x99   :  { %183 = vmatpush.bf16.msrb.mxu1 %v169_v46 }
  0x9d   :  { %184 = vmatpush.bf16.msrb.mxu1 %v168_v49 }
 0x115   :  { %v99_v27 = vpop.f32.mrf.mxu1 }
 0x11d   :  { %v101_v28 = vpop.f32.mrf.mxu1 }
 0x11e   :  { %v104_v29 = vpack.c.bf16 %v101_v28, %v99_v27 }
 0x120   :  { %288 = vmatmul.msk.bf16.vlgmr.msra.gmra.mxu2 %vm62_vm0, %v104_v29 }
 0x1a3   :  { %v127_v32 = vpop.f32.mrf.mxu2 }
 0x1a4   :  { %v128_v33 = vadd.f32 %v298_v30, %v127_v32 }
 0x1a6   :  { %v142_v34 = vmul.f32 %v135_v31, %v128_v33 }
 0x1a8   :  { %v144_v38 = vmax.f32 %v142_v34, 0.0 }
 0x1aa   :  { %v146_v41 = vadd.f32 %v144_v38, %v76_v12 }
 0x1ab   :  { %v129_v35 = vpop.f32.mrf.mxu2 }
 0x1ac   :  { %v130_v36 = vadd.f32 %v298_v30, %v129_v35 }
 0x1ae   :  { %v143_v39 = vmul.f32 %v140_v37, %v130_v36 }
 0x1b0   :  { %v145_v40 = vmax.f32 %v143_v39, 0.0 }
 0x1b2   :  { %v147_v42 = vadd.f32 %v145_v40, %v78_v13 }
 0x1b4   :  { %v148_v43 = vpack.c.bf16 %v147_v42, %v146_v41 }
 0x1b6   :  { %156 = vmatpush.bf16.msra.mxu3 %v148_v43 }
 0x1b9   :  { %289 = vmatmul.msk.bf16.vlgmr.msra.gmra.mxu3 %vm86_vm1, %v82_v17 }
 0x23c   :  { %v158_v50 = vpop.f32.mrf.mxu3 }
 0x244   :  { %v160_v51 = vpop.f32.mrf.mxu3 }
 0x245   :  { %v163_v52 = vpack.c.bf16 %v160_v51, %v158_v50 }
 0x247   :  { %290 = vmatmul.msk.bf16.vlgmr.msrb.gmra.mxu1 %vm62_vm0, %v163_v52 }
 0x2c4   :  { %v186_v57 = vpop.f32.mrf.mxu1 }
 0x2c5   :  { %v187_v58 = vadd.f32 %v299_v56, %v186_v57 }
 0x2c7   :  { %v191_v59 = vmul.f32 %v187_v58, %v135_v31 }
 0x2c9   :  { %v193_v62 = vmax.f32 %v191_v59, 0.0 }
 0x2cb   :  { %v195_v1 = vadd.f32 %v193_v62, %v146_v41 }
 0x2cc   :  { %v188_v60 = vpop.f32.mrf.mxu1 }
 0x2cd   :  { %v189_v61 = vadd.f32 %v299_v56, %v188_v60 }
 0x2cf   :  { %v192_v63 = vmul.f32 %v189_v61, %v140_v37 }
 0x2d1   :  { %v194_v0 = vmax.f32 %v192_v63, 0.0 }
 0x2d3   :  { %v196_v2 = vadd.f32 %v194_v0, %v147_v42 }
 0x2d5   :  { %v199_v4 = vpack.c.bf16 %v196_v2, %v195_v1 }
 0x2d7   :  { %210 = vmatpush.bf16.msrb.mxu3 %v199_v4 }
 0x2da   :  { %291 = vmatmul.msk.bf16.vlgmr.msrb.gmra.mxu3 %vm86_vm1, %v198_v5 }
 0x35d   :  { %v212_v12 = vpop.f32.mrf.mxu3 }
 0x35e   :  { %v216_v13 = vpack.c.bf16 %v212_v12, %v212_v12 }
 0x360   :  { %292 = vmatmul.msk.bf16.vlgmr.msrb.gmra.mxu0 %vm62_vm0, %v216_v13 }
 0x365   :  { %v214_v14 = vpop.f32.mrf.mxu3 }
 0x3dd   :  { %v239_v16 = vpop.f32.mrf.mxu0 }
 0x3de   :  { %v240_v17 = vadd.f32 %v300_v15, %v239_v16 }
 0x3e0   :  { %v243_v18 = vmax.f32 %v240_v17, 0.0 }
 0x3e2   :  { %v244_v19 = vpack.c.bf16 %v243_v18, %v243_v18 }
 0x3e4   :  { %293 = vmatmul.msk.bf16.vlgmr.msrb.gmra.mxu2 %vm86_vm1, %v244_v19 }
 0x3e5   :  { %v241_v20 = vpop.f32.mrf.mxu0 }
 0x467   :  { %v264_v22 = vpop.f32.mrf.mxu2 }
 0x468   :  { %v265_v23 = vadd.f32 %v301_v21, %v264_v22 }
 0x46a   :  { %269 = vst.msk [vmem:[#allocation2] sm:$0x3] %vm268_vm2, %v265_v23 }
 0x46b   :  { %280 = dma.vmem_to_hbm [thread:$0]  %s276_s24, 32, %s278_s26, [#allocation3]  }
 0x46f   :  { %v266_v24 = vpop.f32.mrf.mxu2 }
 0x470   :  { %326 = dma.done.wait [#allocation3], 32  }
 0x471   :  { %327 = vsyncadd [#allocation3], 4294967264 }
 0x472   :  { %285 = vsyncpa [#allocation3], 1 }

// kernel: mygcn_forward.2
= control target key start
LH: loop header
LB: loop body
LE: loop exit
PB: predicated region body
PF: predicated region fallthrough
CT: control target
= control target key end

     0   :  { %vm101_vm0 = vcmask 1044480   ;;  %vm102_vm1 = vcmask 1045504   ;;  %v853_v2 = vmov 65535   ;;  %vm76_vm2 = vcmask 220160   ;;  %s1463_s1 = inlined_call_operand.vmem [shape: f32[27,32], index: 1, kind: input, shape index: {}]   ;;  %s1464_s0 = inlined_call_operand.vmem [shape: f32[128,27], index: 0, kind: input, shape index: {}]   ;;  %s1465_s2 = inlined_call_operand.vmem [shape: f32[1,32], index: 2, kind: input, shape index: {}]   ;;  %s1466_s4 = inlined_call_operand.vmem [shape: f32[1,32], index: 4, kind: input, shape index: {}]   ;;  %s1467_s3 = inlined_call_operand.vmem [shape: f32[32,32], index: 3, kind: input, shape index: {}]   ;;  %s1468_s5 = inlined_call_operand.vmem [shape: f32[128,128], index: 5, kind: input, shape index: {}]   ;;  %s1469_s6 = inlined_call_operand.vmem [shape: f32[128,1], index: 6, kind: input, shape index: {}]   ;;  %s1470_s8 = inlined_call_operand.vmem [shape: f32[32,32], index: 8, kind: input, shape index: {}]   ;;  %s1471_s9 = inlined_call_operand.vmem [shape: f32[1,32], index: 9, kind: input, shape index: {}]   ;;  %s1472_s10 = inlined_call_operand.vmem [shape: f32[32,32], index: 10, kind: input, shape index: {}]   ;;  %s1473_s11 = inlined_call_operand.vmem [shape: f32[1,32], index: 11, kind: input, shape index: {}]   ;;  %s1474_s7 = inlined_call_operand.vmem [shape: f32[16,128], index: 7, kind: input, shape index: {}]   ;;  %s1475_s12 = inlined_call_operand.vmem [shape: f32[16,32], index: 12, kind: output, shape index: {}]  }
   0x1   :  { %v68_v0 = vld [vmem:[%s1463_s1 + $0x10] sm:$0xff]  ;;  %v69_v1 = vld [vmem:[%s1463_s1 + $0x18] sm:$0x7]  ;;  %v103_v3 = vsel %vm101_vm0, 4294967295, %v853_v2  ;;  %v66_v6 = vld [vmem:[%s1463_s1] sm:$0xff]  ;;  %vm191_vm3 = vcmask 261120  }
   0x2   :  { %v71_v4 = vpack.c.bf16 %v69_v1, %v68_v0  ;;  %v104_v5 = vsel %vm102_vm1, %v103_v3, 0  ;;  %v67_v7 = vld [vmem:[%s1463_s1 + $0x8] sm:$0xff]  ;;  %v42_v9 = vld [vmem:[%s1464_s0] sm:$0xff]  ;;  %v52_v12 = vld [vmem:[%s1464_s0 + $0x50] sm:$0xff] }
   0x3   :  { %v70_v10 = vpack.c.bf16 %v67_v7, %v66_v6  ;;  %v43_v11 = vld [vmem:[%s1464_s0 + $0x8] sm:$0xff]  ;;  %v53_v13 = vld [vmem:[%s1464_s0 + $0x58] sm:$0xff]  ;;  %v44_v16 = vld [vmem:[%s1464_s0 + $0x10] sm:$0xff] }
   0x4   :  { %v106_v8 = vand.u32 %v104_v5, %v71_v4  ;;  %v58_v14 = vpack.c.bf16 %v43_v11, %v42_v9  ;;  %v63_v15 = vpack.c.bf16 %v53_v13, %v52_v12  ;;  %v45_v17 = vld [vmem:[%s1464_s0 + $0x18] sm:$0xff]  ;;  %v54_v18 = vld [vmem:[%s1464_s0 + $0x60] sm:$0xff]  ;;  %v55_v19 = vld [vmem:[%s1464_s0 + $0x68] sm:$0xff] }
   0x5   :  { %v59_v20 = vpack.c.bf16 %v45_v17, %v44_v16  ;;  %v64_v21 = vpack.c.bf16 %v55_v19, %v54_v18  ;;  %v46_v22 = vld [vmem:[%s1464_s0 + $0x20] sm:$0xff]  ;;  %v47_v23 = vld [vmem:[%s1464_s0 + $0x28] sm:$0xff]  ;;  %v56_v24 = vld [vmem:[%s1464_s0 + $0x70] sm:$0xff] }
   0x6   :  { %114 = vmatpush.bf16.msra.mxu0 %v106_v8  ;;  %840 = vmatpush.bf16.msra.mxu3 %v106_v8  ;;  %v57_v25 = vld [vmem:[%s1464_s0 + $0x78] sm:$0xff]  ;;  %v60_v26 = vpack.c.bf16 %v47_v23, %v46_v22  ;;  %v48_v28 = vld [vmem:[%s1464_s0 + $0x30] sm:$0xff]  ;;  %v50_v31 = vld [vmem:[%s1464_s0 + $0x40] sm:$0xff] }
   0x7   :  { %v65_v27 = vpack.c.bf16 %v57_v25, %v56_v24  ;;  %v49_v29 = vld [vmem:[%s1464_s0 + $0x38] sm:$0xff]  ;;  %v51_v32 = vld [vmem:[%s1464_s0 + $0x48] sm:$0xff]  ;;  %v183_v34 = vld [vmem:[%s1467_s3 + $0x10] sm:$0xff] }
   0x8   :  { %v61_v30 = vpack.c.bf16 %v49_v29, %v48_v28  ;;  %v62_v33 = vpack.c.bf16 %v51_v32, %v50_v31  ;;  %v184_v35 = vld [vmem:[%s1467_s3 + $0x18] sm:$0xff]  ;;  %v181_v37 = vld [vmem:[%s1467_s3] sm:$0xff]  ;;  %v182_v38 = vld [vmem:[%s1467_s3 + $0x8] sm:$0xff] }
   0x9   :  { %v186_v36 = vpack.c.bf16 %v184_v35, %v183_v34  ;;  %v185_v39 = vpack.c.bf16 %v182_v38, %v181_v37  ;;  %v849_v41 = vld [vmem:[%s1465_s2] ss:$0 sm:$0xff] }
   0xa   :  { %115 = vmatpush.bf16.msra.mxu0 %v70_v10  ;;  %841 = vmatpush.bf16.msra.mxu3 %v70_v10 }
   0xb   :  { %222 = vmatpush.bf16.msra.mxu1 %v186_v36  ;;  %842 = vmatpush.bf16.msra.mxu2 %v186_v36 }
   0xd   :  { %808 = vmatmul.msk.bf16.vlgmr.msra.gmra.mxu0 %vm76_vm2, %v58_v14  ;;  %813 = vmatmul.msk.bf16.vlgmr.msra.gmra.mxu3 %vm76_vm2, %v63_v15 }
   0xf   :  { %223 = vmatpush.bf16.msra.mxu1 %v185_v39  ;;  %843 = vmatpush.bf16.msra.mxu2 %v185_v39 }
  0x1d   :  { %809 = vmatmul.msk.bf16.gmra.mxu0 %vm76_vm2, %v59_v20  ;;  %814 = vmatmul.msk.bf16.gmra.mxu3 %vm76_vm2, %v64_v21 }
  0x2d   :  { %810 = vmatmul.msk.bf16.gmra.mxu0 %vm76_vm2, %v60_v26  ;;  %815 = vmatmul.msk.bf16.gmra.mxu3 %vm76_vm2, %v65_v27 }
  0x3d   :  { %811 = vmatmul.msk.bf16.gmra.mxu0 %vm76_vm2, %v61_v30 }
  0x4d   :  { %812 = vmatmul.msk.bf16.gmra.mxu0 %vm76_vm2, %v62_v33 }
  0x8a   :  { %v117_v40 = vpop.f32.mrf.mxu0 }
  0x8b   :  { %v118_v43 = vadd.f32 %v849_v41, %v117_v40 }
  0x8d   :  { %v157_v46 = vmax.f32 %v118_v43, 0.0 }
  0x90   :  { %v142_v42 = vpop.f32.mrf.mxu3 }
  0x91   :  { %v143_v47 = vadd.f32 %v849_v41, %v142_v42 }
  0x92   :  { %v119_v44 = vpop.f32.mrf.mxu0 }
  0x93   :  { %v120_v45 = vadd.f32 %v849_v41, %v119_v44  ;;  %v167_v51 = vmax.f32 %v143_v47, 0.0 }
  0x95   :  { %v158_v48 = vmax.f32 %v120_v45, 0.0 }
  0x97   :  { %v173_v49 = vpack.c.bf16 %v158_v48, %v157_v46 }
  0x98   :  { %v144_v50 = vpop.f32.mrf.mxu3 }
  0x99   :  { %v145_v52 = vadd.f32 %v849_v41, %v144_v50  ;;  %816 = vmatmul.msk.bf16.vlgmr.msra.gmra.mxu1 %vm191_vm3, %v173_v49 }
  0x9a   :  { %v122_v53 = vpop.f32.mrf.mxu0 }
  0x9b   :  { %v168_v54 = vmax.f32 %v145_v52, 0.0  ;;  %v123_v57 = vadd.f32 %v849_v41, %v122_v53 }
  0x9d   :  { %v178_v55 = vpack.c.bf16 %v168_v54, %v167_v51  ;;  %v159_v60 = vmax.f32 %v123_v57, 0.0 }
  0x9f   :  { %821 = vmatmul.msk.bf16.vlgmr.msra.gmra.mxu2 %vm191_vm3, %v178_v55 }
  0xa0   :  { %v147_v56 = vpop.f32.mrf.mxu3 }
  0xa1   :  { %v148_v61 = vadd.f32 %v849_v41, %v147_v56 }
  0xa2   :  { %v124_v58 = vpop.f32.mrf.mxu0 }
  0xa3   :  { %v125_v59 = vadd.f32 %v849_v41, %v124_v58  ;;  %v169_v1 = vmax.f32 %v148_v61, 0.0 }
  0xa5   :  { %v160_v62 = vmax.f32 %v125_v59, 0.0 }
  0xa7   :  { %v174_v63 = vpack.c.bf16 %v160_v62, %v159_v60 }
  0xa8   :  { %v149_v0 = vpop.f32.mrf.mxu3 }
  0xa9   :  { %v150_v2 = vadd.f32 %v849_v41, %v149_v0  ;;  %817 = vmatmul.msk.bf16.gmra.mxu1 %vm191_vm3, %v174_v63 }
  0xaa   :  { %v127_v3 = vpop.f32.mrf.mxu0 }
  0xab   :  { %v170_v4 = vmax.f32 %v150_v2, 0.0  ;;  %v128_v7 = vadd.f32 %v849_v41, %v127_v3 }
  0xad   :  { %v179_v5 = vpack.c.bf16 %v170_v4, %v169_v1  ;;  %v161_v10 = vmax.f32 %v128_v7, 0.0 }
  0xaf   :  { %822 = vmatmul.msk.bf16.gmra.mxu2 %vm191_vm3, %v179_v5 }
  0xb0   :  { %v152_v6 = vpop.f32.mrf.mxu3 }
  0xb1   :  { %v153_v11 = vadd.f32 %v849_v41, %v152_v6 }
  0xb2   :  { %v129_v8 = vpop.f32.mrf.mxu0 }
  0xb3   :  { %v130_v9 = vadd.f32 %v849_v41, %v129_v8  ;;  %v171_v15 = vmax.f32 %v153_v11, 0.0 }
  0xb5   :  { %v162_v12 = vmax.f32 %v130_v9, 0.0  ;;  %v265_v9 = vld [vmem:[%s1468_s5] sm:$0xff] }
  0xb7   :  { %v175_v13 = vpack.c.bf16 %v162_v12, %v161_v10  ;;  %v266_v10 = vld [vmem:[%s1468_s5 + $0x8] sm:$0xff] }
  0xb8   :  { %v154_v14 = vpop.f32.mrf.mxu3  ;;  %v1068_v12 = vpack.c.bf16 %v266_v10, %v265_v9  ;;  %v293_v9 = vld [vmem:[%s1469_s6 + $0x20] sm:$0xff] }
  0xb9   :  { %v155_v16 = vadd.f32 %v849_v41, %v154_v14  ;;  %818 = vmatmul.msk.bf16.gmra.mxu1 %vm191_vm3, %v175_v13  ;;  %v267_v13 = vld [vmem:[%s1468_s5 + $0x10] sm:$0xff]  ;;  %v268_v14 = vld [vmem:[%s1468_s5 + $0x18] sm:$0xff] }
  0xba   :  { %v132_v17 = vpop.f32.mrf.mxu0 }
  0xbb   :  { %v172_v18 = vmax.f32 %v155_v16, 0.0  ;;  %v133_v20 = vadd.f32 %v849_v41, %v132_v17  ;;  %v269_v16 = vld [vmem:[%s1468_s5 + $0x20] sm:$0xff]  ;;  %v270_v17 = vld [vmem:[%s1468_s5 + $0x28] sm:$0xff] }
  0xbd   :  { %v180_v19 = vpack.c.bf16 %v172_v18, %v171_v15  ;;  %v163_v23 = vmax.f32 %v133_v20, 0.0  ;;  %v1077_v15 = vpack.c.bf16 %v268_v14, %v267_v13  ;;  %v1086_v18 = vpack.c.bf16 %v270_v17, %v269_v16  ;;  %v272_v20 = vld [vmem:[%s1468_s5 + $0x38] sm:$0xff]  ;;  %v289_v13 = vld [vmem:[%s1469_s6] sm:$0xff] }
  0xbf   :  { %823 = vmatmul.msk.bf16.gmra.mxu2 %vm191_vm3, %v180_v19  ;;  %v271_v19 = vld [vmem:[%s1468_s5 + $0x30] sm:$0xff] }
  0xc2   :  { %v134_v21 = vpop.f32.mrf.mxu0 }
  0xc3   :  { %v135_v22 = vadd.f32 %v849_v41, %v134_v21  ;;  %v1095_v21 = vpack.c.bf16 %v272_v20, %v271_v19 }
  0xc5   :  { %v164_v24 = vmax.f32 %v135_v22, 0.0  ;;  %v273_v22 = vld [vmem:[%s1468_s5 + $0x40] sm:$0xff] }
  0xc7   :  { %v176_v25 = vpack.c.bf16 %v164_v24, %v163_v23  ;;  %v274_v23 = vld [vmem:[%s1468_s5 + $0x48] sm:$0xff] }
  0xc8   :  { %v1104_v24 = vpack.c.bf16 %v274_v23, %v273_v22 }
  0xc9   :  { %819 = vmatmul.msk.bf16.gmra.mxu1 %vm191_vm3, %v176_v25  ;;  %v275_v25 = vld [vmem:[%s1468_s5 + $0x50] sm:$0xff] }
  0xca   :  { %v137_v26 = vpop.f32.mrf.mxu0 }
  0xcb   :  { %v138_v27 = vadd.f32 %v849_v41, %v137_v26  ;;  %v276_v26 = vld [vmem:[%s1468_s5 + $0x58] sm:$0xff] }
  0xcd   :  { %v165_v30 = vmax.f32 %v138_v27, 0.0  ;;  %v1113_v27 = vpack.c.bf16 %v276_v26, %v275_v25 }
  0xd2   :  { %v139_v28 = vpop.f32.mrf.mxu0 }
  0xd3   :  { %v140_v29 = vadd.f32 %v849_v41, %v139_v28  ;;  %v850_v41 = vld [vmem:[%s1466_s4] ss:$0 sm:$0xff]  ;;  %v303_v28 = vld [vmem:[%s1469_s6 + $0x70] sm:$0xff] }
  0xd5   :  { %v166_v31 = vmax.f32 %v140_v29, 0.0  ;;  %v854_v29 = vmov 0  }
  0xd6   :  { %846 = vset.pattern.permute.xlu0 %v854_v29  ;;  %848 = vset.pattern.permute.xlu2 %v854_v29 }
  0xd7   :  { %v177_v32 = vpack.c.bf16 %v166_v31, %v165_v30  ;;  %525 = vperm.xlu0 %846, %v303_v28   ;;  %847 = vset.pattern.permute.xlu1 %v854_v29  ;;  %v277_v30 = vld [vmem:[%s1468_s5 + $0x60] sm:$0xff]  ;;  %v278_v31 = vld [vmem:[%s1468_s5 + $0x68] sm:$0xff] }
  0xd9   :  { %820 = vmatmul.msk.bf16.gmra.mxu1 %vm191_vm3, %v177_v32  ;;  %v1125_v32 = vpack.c.bf16 %v278_v31, %v277_v30 }
 0x116   :  { %v225_v33 = vpop.f32.mrf.mxu1 }
 0x117   :  { %v1058_v8 = vadd.f32 %v850_v41, %v225_v33  ;;  %v372_v33 = vld [vmem:[%s1470_s8 + $0x10] sm:$0xff] }
 0x11e   :  { %v227_v34 = vpop.f32.mrf.mxu1 }
 0x11f   :  { %v1054_v6 = vadd.f32 %v850_v41, %v227_v34  ;;  %v373_v34 = vld [vmem:[%s1470_s8 + $0x18] sm:$0xff] }
 0x121   :  { %v305_v11 = vpack.c.bf16 %v1054_v6, %v1058_v8 }
 0x122   :  { %v250_v35 = vpop.f32.mrf.mxu2 }
 0x123   :  { %v1028_v55 = vadd.f32 %v850_v41, %v250_v35  ;;  %v304_v35 = vld [vmem:[%s1469_s6 + $0x78] sm:$0xff] }
 0x124   :  { %530 = vperm.xlu0 %846, %v304_v35  }
 0x126   :  { %v230_v36 = vpop.f32.mrf.mxu1 }
 0x127   :  { %v1052_v5 = vadd.f32 %v850_v41, %v230_v36  ;;  %v375_v36 = vpack.c.bf16 %v373_v34, %v372_v33 }
 0x129   :  { %410 = vmatpush.bf16.msrb.mxu3 %v375_v36 }
 0x12a   :  { %v252_v37 = vpop.f32.mrf.mxu2 }
 0x12b   :  { %v1024_v53 = vadd.f32 %v850_v41, %v252_v37  ;;  %v370_v37 = vld [vmem:[%s1470_s8] sm:$0xff] }
 0x12d   :  { %v310_v56 = vpack.c.bf16 %v1024_v53, %v1028_v55 }
 0x12e   :  { %v232_v38 = vpop.f32.mrf.mxu1 }
 0x12f   :  { %v1048_v3 = vadd.f32 %v850_v41, %v232_v38  ;;  %v371_v38 = vld [vmem:[%s1470_s8 + $0x8] sm:$0xff] }
 0x131   :  { %v306_v7 = vpack.c.bf16 %v1048_v3, %v1052_v5 }
 0x132   :  { %v255_v39 = vpop.f32.mrf.mxu2 }
 0x133   :  { %v1022_v52 = vadd.f32 %v850_v41, %v255_v39  ;;  %v279_v39 = vld [vmem:[%s1468_s5 + $0x70] sm:$0xff] }
 0x136   :  { %v235_v40 = vpop.f32.mrf.mxu1 }
 0x137   :  { %v1046_v2 = vadd.f32 %v850_v41, %v235_v40  ;;  %v280_v40 = vld [vmem:[%s1468_s5 + $0x78] sm:$0xff] }
 0x13a   :  { %v257_v42 = vpop.f32.mrf.mxu2 }
 0x13b   :  { %v1018_v49 = vadd.f32 %v850_v41, %v257_v42  ;;  %v374_v42 = vpack.c.bf16 %v371_v38, %v370_v37 }
 0x13d   :  { %v311_v54 = vpack.c.bf16 %v1018_v49, %v1022_v52  ;;  %411 = vmatpush.bf16.msrb.mxu3 %v374_v42 }
 0x13e   :  { %v237_v43 = vpop.f32.mrf.mxu1 }
 0x13f   :  { %v1042_v0 = vadd.f32 %v850_v41, %v237_v43  ;;  %v1149_v43 = vpack.c.bf16 %v280_v40, %v279_v39 }
 0x141   :  { %v307_v4 = vpack.c.bf16 %v1042_v0, %v1046_v2 }
 0x142   :  { %v260_v44 = vpop.f32.mrf.mxu2 }
 0x143   :  { %v1014_v47 = vadd.f32 %v850_v41, %v260_v44  ;;  %v297_v44 = vld [vmem:[%s1469_s6 + $0x40] sm:$0xff] }
 0x144   :  { %495 = vperm.xlu0 %846, %v297_v44  }
 0x146   :  { %v240_v45 = vpop.f32.mrf.mxu1 }
 0x147   :  { %v1040_v63 = vadd.f32 %v850_v41, %v240_v45  ;;  %v301_v45 = vld [vmem:[%s1469_s6 + $0x60] sm:$0xff] }
 0x148   :  { %515 = vperm.xlu1 %847, %v301_v45  }
 0x14a   :  { %v262_v46 = vpop.f32.mrf.mxu2 }
 0x14b   :  { %v1016_v48 = vadd.f32 %v850_v41, %v262_v46  ;;  %v296_v46 = vld [vmem:[%s1469_s6 + $0x38] sm:$0xff] }
 0x14c   :  { %490 = vperm.xlu0 %846, %v296_v46  }
 0x14d   :  { %v312_v50 = vpack.c.bf16 %v1016_v48, %v1014_v47 }
 0x14e   :  { %v242_v51 = vpop.f32.mrf.mxu1 }
 0x14f   :  { %313 = vmatpush.bf16.msrb.mxu2 %v312_v50  ;;  %v1036_v61 = vadd.f32 %v850_v41, %v242_v51  ;;  %v302_v50 = vld [vmem:[%s1469_s6 + $0x68] sm:$0xff]  ;;  %v300_v51 = vld [vmem:[%s1469_s6 + $0x58] sm:$0xff] }
 0x150   :  { %520 = vperm.xlu1 %847, %v302_v50  }
 0x151   :  { %v308_v1 = vpack.c.bf16 %v1036_v61, %v1040_v63 }
 0x153   :  { %314 = vmatpush.bf16.msrb.mxu2 %v311_v54  ;;  %v291_v54 = vld [vmem:[%s1469_s6 + $0x10] sm:$0xff] }
 0x154   :  { %465 = vperm.xlu0 %846, %v291_v54  }
 0x156   :  { %v245_v57 = vpop.f32.mrf.mxu1 }
 0x157   :  { %315 = vmatpush.bf16.msrb.mxu2 %v310_v56  ;;  %v1032_v59 = vadd.f32 %v850_v41, %v245_v57  ;;  %v298_v57 = vld [vmem:[%s1469_s6 + $0x48] sm:$0xff] }
 0x158   :  { %500 = vperm.xlu1 %847, %v298_v57  }
 0x15e   :  { %v247_v58 = vpop.f32.mrf.mxu1 }
 0x15f   :  { %v1034_v60 = vadd.f32 %v850_v41, %v247_v58  ;;  %v299_v41 = vld [vmem:[%s1469_s6 + $0x50] sm:$0xff] }
 0x160   :  { %505 = vperm.xlu2 %848, %v299_v41   ;;  %v295_v58 = vld [vmem:[%s1469_s6 + $0x30] sm:$0xff]  ;;  %475 = vperm.xlu1 %847, %v293_v9  }
 0x161   :  { %v309_v62 = vpack.c.bf16 %v1034_v60, %v1032_v59 }
 0x163   :  { %316 = vmatpush.bf16.msrb.mxu2 %v309_v62  ;;  %v290_v62 = vld [vmem:[%s1469_s6 + $0x8] sm:$0xff] }
 0x164   :  { %460 = vperm.xlu0 %846, %v290_v62   ;;  %v1210_v62 = vpop.permute.xlu0 %525 }
 0x167   :  { %317 = vmatpush.bf16.msrb.mxu2 %v308_v1 }
 0x168   :  { %510 = vperm.xlu2 %848, %v300_v51  }
 0x16b   :  { %318 = vmatpush.bf16.msrb.mxu2 %v307_v4 }
 0x16f   :  { %319 = vmatpush.bf16.msrb.mxu2 %v306_v7  ;;  %v294_v7 = vld [vmem:[%s1469_s6 + $0x28] sm:$0xff] }
 0x170   :  { %485 = vperm.xlu2 %848, %v295_v58  }
 0x173   :  { %320 = vmatpush.bf16.msrb.mxu2 %v305_v11  ;;  %v292_v11 = vld [vmem:[%s1469_s6 + $0x18] sm:$0xff] }
 0x174   :  { %470 = vperm.xlu1 %847, %v292_v11  }
 0x176   :  { %321 = vmatmul.bf16.vlgmr.msrb.gmra.mxu2 %v1068_v12 }
 0x178   :  { %480 = vperm.xlu2 %848, %v294_v7  }
 0x180   :  { %455 = vperm.xlu2 %848, %v289_v13  }
 0x186   :  { %326 = vmatmul.bf16.gmra.mxu2 %v1077_v15 }
 0x196   :  { %331 = vmatmul.bf16.gmra.mxu2 %v1086_v18  ;;  %v1214_v7 = vpop.permute.xlu0 %530 }
 0x1a6   :  { %336 = vmatmul.bf16.gmra.mxu2 %v1095_v21 }
 0x1b6   :  { %341 = vmatmul.bf16.gmra.mxu2 %v1104_v24  ;;  %v1220_v13 = vpop.permute.xlu0 %495 }
 0x1ba   :  { %v1216_v9 = vpop.permute.xlu2 %505 }
 0x1c6   :  { %346 = vmatmul.bf16.gmra.mxu2 %v1113_v27 }
 0x1d6   :  { %351 = vmatmul.bf16.gmra.mxu2 %v1125_v32 }
 0x1e6   :  { %356 = vmatmul.bf16.gmra.mxu2 %v1149_v43 }
 0x1f9   :  { %v322_v56 = vpop.f32.mrf.mxu2 }
 0x201   :  { %v324_v1 = vpop.f32.mrf.mxu2 }
 0x202   :  { %v362_v4 = vpack.c.bf16 %v324_v1, %v322_v56 }
 0x204   :  { %824 = vmatmul.msk.bf16.vlgmr.msrb.gmra.mxu3 %vm191_vm3, %v362_v4  ;;  %v1212_v4 = vpop.permute.xlu1 %515 }
 0x209   :  { %v327_v10 = vpop.f32.mrf.mxu2 }
 0x20c   :  { %v1218_v11 = vpop.permute.xlu1 %520 }
 0x211   :  { %v329_v14 = vpop.f32.mrf.mxu2 }
 0x212   :  { %v363_v16 = vpack.c.bf16 %v329_v14, %v327_v10 }
 0x214   :  { %825 = vmatmul.msk.bf16.gmra.mxu3 %vm191_vm3, %v363_v16  ;;  %v1225_v16 = vld [vmem:[%s1471_s9] ss:$0 sm:$0xff] }
 0x219   :  { %v332_v17 = vpop.f32.mrf.mxu2 }
 0x221   :  { %v334_v19 = vpop.f32.mrf.mxu2 }
 0x222   :  { %v364_v20 = vpack.c.bf16 %v334_v19, %v332_v17  ;;  %v1227_v17 = vpop.permute.xlu2 %510 }
 0x224   :  { %826 = vmatmul.msk.bf16.gmra.mxu3 %vm191_vm3, %v364_v20 }
 0x229   :  { %v337_v22 = vpop.f32.mrf.mxu2 }
 0x231   :  { %v339_v23 = vpop.f32.mrf.mxu2 }
 0x232   :  { %v365_v25 = vpack.c.bf16 %v339_v23, %v337_v22  ;;  %v1231_v22 = vpop.permute.xlu1 %500 }
 0x234   :  { %827 = vmatmul.msk.bf16.gmra.mxu3 %vm191_vm3, %v365_v25 }
 0x239   :  { %v342_v26 = vpop.f32.mrf.mxu2 }
 0x241   :  { %v344_v28 = vpop.f32.mrf.mxu2 }
 0x242   :  { %v366_v29 = vpack.c.bf16 %v344_v28, %v342_v26 }
 0x244   :  { %828 = vmatmul.msk.bf16.gmra.mxu3 %vm191_vm3, %v366_v29 }
 0x249   :  { %v347_v30 = vpop.f32.mrf.mxu2 }
 0x251   :  { %v349_v31 = vpop.f32.mrf.mxu2 }
 0x252   :  { %v367_v33 = vpack.c.bf16 %v349_v31, %v347_v30  ;;  %v1238_v31 = vpop.permute.xlu0 %490 }
 0x254   :  { %829 = vmatmul.msk.bf16.gmra.mxu3 %vm191_vm3, %v367_v33 }
 0x259   :  { %v352_v34 = vpop.f32.mrf.mxu2 }
 0x261   :  { %v354_v35 = vpop.f32.mrf.mxu2 }
 0x262   :  { %v368_v36 = vpack.c.bf16 %v354_v35, %v352_v34 }
 0x264   :  { %830 = vmatmul.msk.bf16.gmra.mxu3 %vm191_vm3, %v368_v36 }
 0x269   :  { %v357_v37 = vpop.f32.mrf.mxu2 }
 0x271   :  { %v359_v38 = vpop.f32.mrf.mxu2 }
 0x272   :  { %v369_v39 = vpack.c.bf16 %v359_v38, %v357_v37  ;;  %v1243_v37 = vpop.permute.xlu2 %485 }
 0x274   :  { %831 = vmatmul.msk.bf16.gmra.mxu3 %vm191_vm3, %v369_v39 }
 0x287   :  { %v1202_v40 = vpop.f32.mrf.mxu3 }
 0x28f   :  { %v1204_v42 = vpop.f32.mrf.mxu3 }
 0x297   :  { %v1206_v44 = vpop.f32.mrf.mxu3 }
 0x29f   :  { %v1208_v45 = vpop.f32.mrf.mxu3 }
 0x2a7   :  { %v423_v41 = vpop.f32.mrf.mxu3 }
 0x2af   :  { %v425_v46 = vpop.f32.mrf.mxu3 }
 0x2b7   :  { %v428_v50 = vpop.f32.mrf.mxu3 }
 0x2bf   :  { %v430_v51 = vpop.f32.mrf.mxu3 }
 0x2c7   :  { %v433_v54 = vpop.f32.mrf.mxu3 }
 0x2cf   :  { %v435_v56 = vpop.f32.mrf.mxu3 }
 0x2d0   :  { %v436_v38 = vadd.f32 %v1225_v16, %v435_v56 }
 0x2d2   :  { %v542_v56 = vmul.f32 %v1231_v22, %v436_v38  ;;  %v424_v38 = vadd.f32 %v1225_v16, %v423_v41 }
 0x2d7   :  { %v438_v57 = vpop.f32.mrf.mxu3 }
 0x2d8   :  { %v439_v33 = vadd.f32 %v1225_v16, %v438_v57 }
 0x2df   :  { %v440_v58 = vpop.f32.mrf.mxu3 }
 0x2e0   :  { %v441_v28 = vadd.f32 %v1225_v16, %v440_v58 }
 0x2e2   :  { %v544_v39 = vmul.f32 %v1227_v17, %v441_v28 }
 0x2e7   :  { %v443_v1 = vpop.f32.mrf.mxu3 }
 0x2e8   :  { %v444_v23 = vadd.f32 %v1225_v16, %v443_v1 }
 0x2ea   :  { %v545_v34 = vmul.f32 %v1212_v4, %v444_v23  ;;  %v1255_v23 = vpop.permute.xlu1 %475 }
 0x2ef   :  { %v445_v10 = vpop.f32.mrf.mxu3 }
 0x2f0   :  { %v446_v20 = vadd.f32 %v1225_v16, %v445_v10  ;;  %v434_v10 = vadd.f32 %v1225_v16, %v433_v54 }
 0x2f2   :  { %v546_v29 = vmul.f32 %v1218_v11, %v446_v20  ;;  %v1293_v41 = vpop.permute.xlu1 %470 }
 0x2f4   :  { %v562_v58 = vmax.f32 %v546_v29, 0.0  ;;  %v429_v29 = vadd.f32 %v1225_v16, %v428_v50  ;;  %v1278_v50 = vpop.permute.xlu2 %480 }
 0x2f6   :  { %v1262_v54 = vadd.f32 %v562_v58, %v1018_v49 }
 0x2f7   :  { %v448_v14 = vpop.f32.mrf.mxu3 }
 0x2f8   :  { %v449_v19 = vadd.f32 %v1225_v16, %v448_v14  ;;  %v543_v14 = vmul.f32 %v1216_v9, %v439_v33  ;;  %v1269_v33 = vpop.permute.xlu0 %465 }
 0x2fa   :  { %v547_v25 = vmul.f32 %v1210_v62, %v449_v19  ;;  %v561_v19 = vmax.f32 %v545_v34, 0.0 }
 0x2fc   :  { %v563_v35 = vmax.f32 %v547_v25, 0.0  ;;  %v431_v25 = vadd.f32 %v1225_v16, %v430_v51  ;;  %v426_v51 = vadd.f32 %v1225_v16, %v425_v46  ;;  %v421_v46 = vadd.f32 %v1225_v16, %v1208_v45 }
 0x2fe   :  { %v1250_v57 = vadd.f32 %v563_v35, %v1014_v47  ;;  %v541_v47 = vmul.f32 %v1220_v13, %v434_v10  ;;  %v540_v34 = vmul.f32 %v1238_v31, %v431_v25  ;;  %v558_v35 = vmax.f32 %v542_v56, 0.0 }
 0x2ff   :  { %v450_v26 = vpop.f32.mrf.mxu3  ;;  %v416_v56 = vadd.f32 %v1225_v16, %v1204_v42 }
 0x300   :  { %v451_v30 = vadd.f32 %v1225_v16, %v450_v26  ;;  %v560_v26 = vmax.f32 %v544_v39, 0.0  ;;  %v557_v39 = vmax.f32 %v541_v47, 0.0  ;;  %v556_v10 = vmax.f32 %v540_v34, 0.0 }
 0x301   :  { %v414_v47 = vadd.f32 %v1225_v16, %v1202_v40 }
 0x302   :  { %v548_v36 = vmul.f32 %v1214_v7, %v451_v30  ;;  %v559_v30 = vmax.f32 %v543_v14, 0.0  ;;  %v1291_v14 = vadd.f32 %v558_v35, %v1034_v60  ;;  %v1299_v45 = vadd.f32 %v557_v39, %v1032_v59 }
 0x304   :  { %v564_v1 = vmax.f32 %v548_v36, 0.0  ;;  %v1276_v36 = vadd.f32 %v560_v26, %v1024_v53  ;;  %v1283_v58 = vadd.f32 %v559_v30, %v1028_v55  ;;  %v537_v55 = vmul.f32 %v1255_v23, %v424_v38 }
 0x305   :  { %v536_v26 = vmul.f32 %v1293_v41, %v421_v46  ;;  %v585_v60 = vpack.c.bf16 %v1291_v14, %v1299_v45 }
 0x306   :  { %v1253_v20 = vadd.f32 %v564_v1, %v1016_v48  ;;  %v1267_v48 = vadd.f32 %v561_v19, %v1022_v52  ;;  %v539_v52 = vmul.f32 %v1243_v37, %v429_v29  ;;  %v538_v1 = vmul.f32 %v1278_v50, %v426_v51  ;;  %v1317_v51 = vpop.permute.xlu2 %455 }
 0x307   :  { %v586_v53 = vpack.c.bf16 %v1276_v36, %v1283_v58  ;;  %v419_v19 = vadd.f32 %v1225_v16, %v1206_v44  ;;  %v1307_v29 = vadd.f32 %v556_v10, %v1036_v61  ;;  %v1309_v44 = vpop.permute.xlu0 %460  ;;  %v553_v30 = vmax.f32 %v537_v55, 0.0 }
 0x308   :  { %v588_v28 = vpack.c.bf16 %v1253_v20, %v1250_v57  ;;  %v587_v49 = vpack.c.bf16 %v1262_v54, %v1267_v48  ;;  %v555_v25 = vmax.f32 %v539_v52, 0.0  ;;  %v534_v34 = vmul.f32 %v1309_v44, %v416_v56 }
 0x309   :  { %v535_v59 = vmul.f32 %v1269_v33, %v419_v19  ;;  %v552_v35 = vmax.f32 %v536_v26, 0.0  ;;  %v533_v40 = vmul.f32 %v1317_v51, %v414_v47  ;;  %v1327_v38 = vadd.f32 %v553_v30, %v1046_v2 }
 0x30a   :  { %589 = vmatpush.bf16.msrb.mxu0 %v588_v28  ;;  %v554_v28 = vmax.f32 %v538_v1, 0.0  ;;  %v1315_v42 = vadd.f32 %v555_v25, %v1040_v63  ;;  %v550_v63 = vmax.f32 %v534_v34, 0.0 }
 0x30b   :  { %v551_v16 = vmax.f32 %v535_v59, 0.0  ;;  %v1330_v52 = vadd.f32 %v552_v35, %v1048_v3  ;;  %v549_v46 = vmax.f32 %v533_v40, 0.0 }
 0x30c   :  { %v584_v61 = vpack.c.bf16 %v1307_v29, %v1315_v42 }
 0x30d   :  { %v1335_v1 = vadd.f32 %v551_v16, %v1052_v5  ;;  %v1343_v2 = vadd.f32 %v549_v46, %v1058_v8  ;;  %v648_v5 = vld [vmem:[%s1472_s10 + $0x10] sm:$0xff] }
 0x30e   :  { %590 = vmatpush.bf16.msrb.mxu0 %v587_v49  ;;  %v1323_v49 = vadd.f32 %v554_v28, %v1042_v0  ;;  %v1338_v0 = vadd.f32 %v550_v63, %v1054_v6  ;;  %v649_v6 = vld [vmem:[%s1472_s10 + $0x18] sm:$0xff] }
 0x30f   :  { %v582_v10 = vpack.c.bf16 %v1330_v52, %v1335_v1  ;;  %v651_v8 = vpack.c.bf16 %v649_v6, %v648_v5 }
 0x310   :  { %v583_v39 = vpack.c.bf16 %v1323_v49, %v1327_v38  ;;  %v581_v3 = vpack.c.bf16 %v1338_v0, %v1343_v2 }
 0x311   :  { %686 = vmatpush.bf16.msrb.mxu1 %v651_v8 }
 0x312   :  { %591 = vmatpush.bf16.msrb.mxu0 %v586_v53 }
 0x316   :  { %592 = vmatpush.bf16.msrb.mxu0 %v585_v60 }
 0x31a   :  { %593 = vmatpush.bf16.msrb.mxu0 %v584_v61 }
 0x31e   :  { %594 = vmatpush.bf16.msrb.mxu0 %v583_v39 }
 0x322   :  { %595 = vmatpush.bf16.msrb.mxu0 %v582_v10  ;;  %v1378_v10 = vld [vmem:[%s1473_s11] ss:$0 sm:$0xff] }
 0x326   :  { %596 = vmatpush.bf16.msrb.mxu0 %v581_v3 }
 0x329   :  { %597 = vmatmul.bf16.vlgmr.msrb.gmra.mxu0 %v1068_v12  ;;  %v646_v12 = vld [vmem:[%s1472_s10] sm:$0xff] }
 0x339   :  { %602 = vmatmul.bf16.gmra.mxu0 %v1077_v15  ;;  %v647_v15 = vld [vmem:[%s1472_s10 + $0x8] sm:$0xff] }
 0x349   :  { %607 = vmatmul.bf16.gmra.mxu0 %v1086_v18  ;;  %v650_v18 = vpack.c.bf16 %v647_v15, %v646_v12 }
 0x34b   :  { %687 = vmatpush.bf16.msrb.mxu1 %v650_v18 }
 0x359   :  { %612 = vmatmul.bf16.gmra.mxu0 %v1095_v21 }
 0x369   :  { %617 = vmatmul.bf16.gmra.mxu0 %v1104_v24 }
 0x379   :  { %622 = vmatmul.bf16.gmra.mxu0 %v1113_v27 }
 0x389   :  { %627 = vmatmul.bf16.gmra.mxu0 %v1125_v32 }
 0x399   :  { %632 = vmatmul.bf16.gmra.mxu0 %v1149_v43 }
 0x3a6   :  { %v598_v21 = vpop.f32.mrf.mxu0 }
 0x3ae   :  { %v600_v24 = vpop.f32.mrf.mxu0 }
 0x3af   :  { %v638_v27 = vpack.c.bf16 %v600_v24, %v598_v21 }
 0x3b1   :  { %832 = vmatmul.msk.bf16.vlgmr.msrb.gmra.mxu1 %vm191_vm3, %v638_v27 }
 0x3b6   :  { %v603_v53 = vpop.f32.mrf.mxu0 }
 0x3be   :  { %v605_v32 = vpop.f32.mrf.mxu0 }
 0x3bf   :  { %v639_v19 = vpack.c.bf16 %v605_v32, %v603_v53 }
 0x3c1   :  { %833 = vmatmul.msk.bf16.gmra.mxu1 %vm191_vm3, %v639_v19 }
 0x3c6   :  { %v608_v55 = vpop.f32.mrf.mxu0 }
 0x3ce   :  { %v610_v25 = vpop.f32.mrf.mxu0 }
 0x3cf   :  { %v640_v56 = vpack.c.bf16 %v610_v25, %v608_v55 }
 0x3d1   :  { %834 = vmatmul.msk.bf16.gmra.mxu1 %vm191_vm3, %v640_v56 }
 0x3d6   :  { %v613_v26 = vpop.f32.mrf.mxu0 }
 0x3de   :  { %v615_v28 = vpop.f32.mrf.mxu0 }
 0x3df   :  { %v641_v60 = vpack.c.bf16 %v615_v28, %v613_v26 }
 0x3e1   :  { %835 = vmatmul.msk.bf16.gmra.mxu1 %vm191_vm3, %v641_v60 }
 0x3e6   :  { %v618_v43 = vpop.f32.mrf.mxu0 }
 0x3ee   :  { %v620_v47 = vpop.f32.mrf.mxu0 }
 0x3ef   :  { %v642_v59 = vpack.c.bf16 %v620_v47, %v618_v43 }
 0x3f1   :  { %836 = vmatmul.msk.bf16.gmra.mxu1 %vm191_vm3, %v642_v59 }
 0x3f6   :  { %v623_v30 = vpop.f32.mrf.mxu0 }
 0x3fe   :  { %v625_v34 = vpop.f32.mrf.mxu0 }
 0x3ff   :  { %v643_v35 = vpack.c.bf16 %v625_v34, %v623_v30 }
 0x401   :  { %837 = vmatmul.msk.bf16.gmra.mxu1 %vm191_vm3, %v643_v35 }
 0x406   :  { %v628_v61 = vpop.f32.mrf.mxu0 }
 0x40e   :  { %v630_v40 = vpop.f32.mrf.mxu0 }
 0x40f   :  { %v644_v16 = vpack.c.bf16 %v630_v40, %v628_v61 }
 0x411   :  { %838 = vmatmul.msk.bf16.gmra.mxu1 %vm191_vm3, %v644_v16 }
 0x416   :  { %v633_v63 = vpop.f32.mrf.mxu0 }
 0x41e   :  { %v635_v39 = vpop.f32.mrf.mxu0 }
 0x41f   :  { %v645_v46 = vpack.c.bf16 %v635_v39, %v633_v63 }
 0x421   :  { %839 = vmatmul.msk.bf16.gmra.mxu1 %vm191_vm3, %v645_v46 }
 0x42e   :  { %v689_v3 = vpop.f32.mrf.mxu1 }
 0x42f   :  { %v690_v5 = vadd.f32 %v1378_v10, %v689_v3 }
 0x431   :  { %v729_v6 = vmul.f32 %v690_v5, %v1317_v51 }
 0x433   :  { %v745_v15 = vmax.f32 %v729_v6, 0.0 }
 0x435   :  { %v1385_v24 = vadd.f32 %v745_v15, %v1343_v2 }
 0x436   :  { %v691_v8 = vpop.f32.mrf.mxu1 }
 0x437   :  { %v692_v12 = vadd.f32 %v1378_v10, %v691_v8 }
 0x439   :  { %v730_v18 = vmul.f32 %v692_v12, %v1309_v44 }
 0x43b   :  { %v746_v21 = vmax.f32 %v730_v18, 0.0 }
 0x43d   :  { %v1388_v27 = vadd.f32 %v746_v21, %v1338_v0 }
 0x43e   :  { %v694_v53 = vpop.f32.mrf.mxu1 }
 0x43f   :  { %v780_v32 = vpack.c.bf16 %v1388_v27, %v1385_v24  ;;  %v695_v19 = vadd.f32 %v1378_v10, %v694_v53 }
 0x441   :  { %v731_v51 = vmul.f32 %v695_v19, %v1269_v33 }
 0x443   :  { %v747_v56 = vmax.f32 %v731_v51, 0.0 }
 0x445   :  { %v1397_v2 = vadd.f32 %v747_v56, %v1335_v1 }
 0x446   :  { %v696_v55 = vpop.f32.mrf.mxu1 }
 0x447   :  { %v697_v25 = vadd.f32 %v1378_v10, %v696_v55 }
 0x449   :  { %v732_v44 = vmul.f32 %v697_v25, %v1293_v41 }
 0x44b   :  { %v748_v26 = vmax.f32 %v732_v44, 0.0 }
 0x44d   :  { %v1400_v0 = vadd.f32 %v748_v26, %v1330_v52 }
 0x44e   :  { %v699_v28 = vpop.f32.mrf.mxu1 }
 0x44f   :  { %v781_v60 = vpack.c.bf16 %v1400_v0, %v1397_v2  ;;  %v700_v43 = vadd.f32 %v1378_v10, %v699_v28 }
 0x451   :  { %v733_v33 = vmul.f32 %v700_v43, %v1255_v23 }
 0x453   :  { %v749_v30 = vmax.f32 %v733_v33, 0.0 }
 0x455   :  { %v1409_v1 = vadd.f32 %v749_v30, %v1327_v38 }
 0x456   :  { %v701_v47 = vpop.f32.mrf.mxu1 }
 0x457   :  { %v702_v59 = vadd.f32 %v1378_v10, %v701_v47 }
 0x459   :  { %v734_v41 = vmul.f32 %v702_v59, %v1278_v50 }
 0x45b   :  { %v750_v34 = vmax.f32 %v734_v41, 0.0 }
 0x45d   :  { %v766_v52 = vadd.f32 %v750_v34, %v1323_v49 }
 0x45e   :  { %v704_v35 = vpop.f32.mrf.mxu1 }
 0x45f   :  { %v782_v61 = vpack.c.bf16 %v766_v52, %v1409_v1  ;;  %v705_v40 = vadd.f32 %v1378_v10, %v704_v35 }
 0x461   :  { %v735_v16 = vmul.f32 %v705_v40, %v1243_v37 }
 0x463   :  { %v751_v39 = vmax.f32 %v735_v16, 0.0 }
 0x465   :  { %v767_v3 = vadd.f32 %v751_v39, %v1315_v42 }
 0x466   :  { %v706_v23 = vpop.f32.mrf.mxu1 }
 0x467   :  { %v707_v63 = vadd.f32 %v1378_v10, %v706_v23 }
 0x469   :  { %v736_v46 = vmul.f32 %v707_v63, %v1238_v31 }
 0x46b   :  { %v752_v50 = vmax.f32 %v736_v46, 0.0 }
 0x46d   :  { %v768_v38 = vadd.f32 %v752_v50, %v1307_v29 }
 0x46e   :  { %v709_v5 = vpop.f32.mrf.mxu1 }
 0x46f   :  { %v783_v49 = vpack.c.bf16 %v768_v38, %v767_v3  ;;  %v710_v47 = vadd.f32 %v1378_v10, %v709_v5 }
 0x471   :  { %v737_v52 = vmul.f32 %v710_v47, %v1220_v13  ;;  %v777_v13 = vld [vmem:[%s1474_s7] sm:$0xff] }
 0x473   :  { %v753_v16 = vmax.f32 %v737_v52, 0.0 }
 0x476   :  { %v711_v6 = vpop.f32.mrf.mxu1 }
 0x477   :  { %v712_v28 = vadd.f32 %v1378_v10, %v711_v6 }
 0x47e   :  { %v714_v8 = vpop.f32.mrf.mxu1 }
 0x47f   :  { %v715_v25 = vadd.f32 %v1378_v10, %v714_v8 }
 0x481   :  { %v739_v59 = vmul.f32 %v715_v25, %v1216_v9 }
 0x486   :  { %v716_v12 = vpop.f32.mrf.mxu1 }
 0x487   :  { %v717_v42 = vadd.f32 %v1378_v10, %v716_v12 }
 0x489   :  { %v740_v43 = vmul.f32 %v717_v42, %v1227_v17  ;;  %v755_v17 = vmax.f32 %v739_v59, 0.0 }
 0x48b   :  { %v756_v34 = vmax.f32 %v740_v43, 0.0 }
 0x48d   :  { %v772_v9 = vadd.f32 %v756_v34, %v1276_v36 }
 0x48e   :  { %v719_v15 = vpop.f32.mrf.mxu1 }
 0x48f   :  { %v720_v19 = vadd.f32 %v1378_v10, %v719_v15 }
 0x491   :  { %v741_v56 = vmul.f32 %v720_v19, %v1212_v4  ;;  %v738_v4 = vmul.f32 %v712_v28, %v1231_v22 }
 0x496   :  { %v721_v18 = vpop.f32.mrf.mxu1 }
 0x497   :  { %v722_v53 = vadd.f32 %v1378_v10, %v721_v18 }
 0x499   :  { %v742_v29 = vmul.f32 %v722_v53, %v1218_v11  ;;  %v757_v11 = vmax.f32 %v741_v56, 0.0 }
 0x49b   :  { %v758_v33 = vmax.f32 %v742_v29, 0.0  ;;  %v773_v35 = vadd.f32 %v757_v11, %v1267_v48  ;;  %v778_v48 = vld [vmem:[%s1474_s7 + $0x8] sm:$0xff] }
 0x49c   :  { %v779_v36 = vpack.c.bf16 %v778_v48, %v777_v13 }
 0x49e   :  { %v724_v21 = vpop.f32.mrf.mxu1 }
 0x49f   :  { %v725_v37 = vadd.f32 %v1378_v10, %v724_v21 }
 0x4a1   :  { %v743_v31 = vmul.f32 %v725_v37, %v1210_v62 }
 0x4a3   :  { %v759_v44 = vmax.f32 %v743_v31, 0.0 }
 0x4a5   :  { %v775_v30 = vadd.f32 %v759_v44, %v1250_v57  ;;  %v771_v57 = vadd.f32 %v755_v17, %v1283_v58 }
 0x4a6   :  { %v726_v51 = vpop.f32.mrf.mxu1 }
 0x4a7   :  { %v727_v55 = vadd.f32 %v1378_v10, %v726_v51  ;;  %v754_v10 = vmax.f32 %v738_v4, 0.0 }
 0x4a9   :  { %v744_v26 = vmul.f32 %v727_v55, %v1214_v7  ;;  %v774_v7 = vadd.f32 %v758_v33, %v1262_v54  ;;  %v770_v22 = vadd.f32 %v754_v10, %v1291_v14  ;;  %v769_v54 = vadd.f32 %v753_v16, %v1299_v45 }
 0x4ab   :  { %v760_v62 = vmax.f32 %v744_v26, 0.0  ;;  %v786_v40 = vpack.c.bf16 %v774_v7, %v773_v35  ;;  %v784_v23 = vpack.c.bf16 %v770_v22, %v769_v54 }
 0x4ad   :  { %v776_v41 = vadd.f32 %v760_v62, %v1253_v20  ;;  %v785_v20 = vpack.c.bf16 %v772_v9, %v771_v57 }
 0x4af   :  { %v787_v1 = vpack.c.bf16 %v776_v41, %v775_v30 }
 0x4b1   :  { %788 = vmatpush.bf16.msra.mxu3 %v787_v1 }
 0x4b5   :  { %789 = vmatpush.bf16.msra.mxu3 %v786_v40 }
 0x4b9   :  { %790 = vmatpush.bf16.msra.mxu3 %v785_v20 }
 0x4bd   :  { %791 = vmatpush.bf16.msra.mxu3 %v784_v23 }
 0x4c1   :  { %792 = vmatpush.bf16.msra.mxu3 %v783_v49 }
 0x4c5   :  { %793 = vmatpush.bf16.msra.mxu3 %v782_v61 }
 0x4c9   :  { %794 = vmatpush.bf16.msra.mxu3 %v781_v60 }
 0x4cd   :  { %795 = vmatpush.bf16.msra.mxu3 %v780_v32 }
 0x4d0   :  { %796 = vmatmul.bf16.vlgmr.msra.gmra.mxu3 %v779_v36 }
 0x553   :  { %v797_v58 = vpop.f32.mrf.mxu3 }
 0x554   :  { %802 = vst.msk [vmem:[%s1475_s12] sm:$0xff] %vm191_vm3, %v797_v58 }
 0x55b   :  { %v799_v14 = vpop.f32.mrf.mxu3 }
 0x55c   :  { %803 = vst.msk [vmem:[%s1475_s12 + $0x8] sm:$0xff] %vm191_vm3, %v799_v14 }

</bundles_post_ra>
